<compile_context>
chip_gen: v7x
topology: tpu7x:2x2x1
jax: 0.10.0
libtpu: 0.0.40
codegen_flags: <defaults>
</compile_context>

<pallas_src>
import functools
import math

import numpy as np
import jax
import jax.numpy as jnp
from jax.experimental import pallas as pl
from jax.experimental.pallas import tpu as pltpu

# ---------------- synthetic config (cfg.MODEL.SPARSE_INST.DECODER.*) ----------------
IN_CHANNELS = 4
DIM         = 8      # INST.DIM
NUM_CONVS   = 2      # INST.CONVS
NUM_MASKS   = 8      # NUM_MASKS
KERNEL_DIM  = 16     # KERNEL_DIM
NUM_GROUPS  = 4      # GROUPS (forward hard-codes 4)
NUM_CLASSES = 8      # NUM_CLASSES
PRIOR_PROB  = 0.01

B, H, W     = 2, 16, 16
HW          = H * W
N_TOTAL     = NUM_MASKS * NUM_GROUPS          # iam output channels (32)
EXPAND_DIM  = DIM * NUM_GROUPS                # 32
HEAD_OUT    = NUM_CLASSES + KERNEL_DIM + 1    # fused head width (25)
CIN_PAD     = ((IN_CHANNELS + 7) // 8) * 8    # input channels padded to sublane tile
DIM2        = DIM + 1                         # conv2 channels + constant-one channel

# ------------- parameter slab layout (single (128,128) f32 VMEM input) -------------
K1       = 9 * CIN_PAD          # conv1 im2col contraction width (72)
K2       = 9 * DIM              # conv2 / iam-conv im2col contraction width (72)
BIAS_COL = max(K1, K2)          # conv biases live in this column
SLAB_ROWS, SLAB_COLS = 128, 128
R_W1, R_W2, R_WIAM, R_FC, R_WHEAD, R_FCB, R_BHEAD = 0, 8, 24, 56, 88, 120, 121
assert BIAS_COL < SLAB_COLS and EXPAND_DIM <= SLAB_COLS and HEAD_OUT <= SLAB_COLS
assert R_BHEAD < SLAB_ROWS


# ================================ fused Pallas kernel ================================
def _fused_kernel(x_ref, mask_ref, slab_ref, iam_ref, heads_ref, *, nb, lp, wp):
    """Whole GroupInstanceBranch forward, both batch elements in one invocation.

    Layout: channels on sublanes; the zero-padded (Hp, Wp) frame is flattened,
    lane-padded to `lp` (multiple of 128), and the batch is folded onto lanes
    (total lane width nb*lp).  `mask` is 1 only on interior frame positions.
    """
    ltot = nb * lp
    mask = mask_ref[...]                                           # (1, ltot)

    # --- parameter slab: static sub-slices (full 128-lane rows, then column slices)
    def blk(r, n):
        return slab_ref[r:r + n, :]
    w1b, w2b, wib = blk(R_W1, DIM), blk(R_W2, DIM2), blk(R_WIAM, N_TOTAL)
    w1,   b1 = w1b[:, :K1], w1b[:, BIAS_COL:BIAS_COL + 1]
    w2,   b2 = w2b[:, :K2], w2b[:, BIAS_COL:BIAS_COL + 1]
    wiam, bi = wib[:, :K2], wib[:, BIAS_COL:BIAS_COL + 1]
    fcw   = blk(R_FC, EXPAND_DIM)[:, :EXPAND_DIM]                  # (E, E)
    whead = blk(R_WHEAD, EXPAND_DIM)                               # (E, 128), cols>=25 zero
    fcb   = blk(R_FCB, 1)[:, :EXPAND_DIM]                          # (1, E)
    bhead = blk(R_BHEAD, 1)                                        # (1, 128)

    # --- 3x3 taps as lane rotations of the flat padded frame (wrap lands on masked lanes)
    shifts = tuple((kh - 1) * wp + (kw - 1) for kh in range(3) for kw in range(3))

    def im2col(src):                                               # (C, ltot) -> (9C, ltot)
        cols = [src if s == 0 else pltpu.roll(src, (-s) % ltot, 1) for s in shifts]
        return jnp.concatenate(cols, axis=0)

    def conv(src, w, b):                                           # conv + bias + ReLU + mask
        out = jnp.dot(w, im2col(src), preferred_element_type=jnp.float32) + b
        return jnp.maximum(out, 0.0) * mask   # border/pad lanes -> 0 == next layer's zero pad

    # inst_convs: two 3x3 conv + ReLU; conv2 carries an extra constant-one channel
    f1 = conv(x_ref[...], w1, b1)                                  # (DIM,  ltot)
    f2 = conv(f1, w2, b2)                                          # (DIM2, ltot); row DIM == mask
    f  = f2[0:DIM, :]                                              # real feature channels

    # grouped iam conv (block-diagonal dense weight == groups=4), no ReLU, raw store
    iam = jnp.dot(wiam, im2col(f), preferred_element_type=jnp.float32) + bi
    iam_ref[...] = iam                                             # (N, ltot) lane-dense store

    # sigmoid (approx EUP reciprocal), interior-masked
    p = pl.reciprocal(1.0 + jnp.exp(-iam), approx=True) * mask     # (N, ltot)

    # per-batch aggregation; the constant-one channel of f2 yields the normalizer column
    gs = []
    for bidx in range(nb):
        pb = p[:, bidx * lp:(bidx + 1) * lp]                       # (N, lp) aligned slice
        fb = f2[:, bidx * lp:(bidx + 1) * lp]                      # (DIM2, lp)
        r = jax.lax.dot_general(pb, fb, (((1,), (1,)), ((), ())),
                                preferred_element_type=jnp.float32)   # (N, DIM2)
        inv  = pl.reciprocal(jnp.maximum(r[:, DIM:DIM + 1], 1e-6), approx=True)
        inst = r[:, :DIM] * inv                                    # normalized inst features
        gs.append(jnp.concatenate(                                 # regroup -> (M, E)
            [inst[g * NUM_MASKS:(g + 1) * NUM_MASKS, :] for g in range(NUM_GROUPS)],
            axis=1))
    g_all = jnp.concatenate(gs, axis=0)                            # (nb*M, E)

    # fc + ReLU, then cls/mask_kernel/objectness as ONE fused (E, 128) matmul
    h = jnp.maximum(jnp.dot(g_all, fcw, preferred_element_type=jnp.float32) + fcb, 0.0)
    heads_ref[...] = jnp.dot(h, whead, preferred_element_type=jnp.float32) + bhead


# ================================ forward wrapper ================================
@jax.jit
def group_instance_branch_forward(x_nchw, slab):
    Bx, Cin, Hx, Wx = x_nchw.shape
    Hp, Wp = Hx + 2, Wx + 2
    L  = Hp * Wp
    Lp = ((L + 127) // 128) * 128              # lane-pad the flat frame (324 -> 384)
    Ltot = Bx * Lp

    # input prep (one small XLA fusion): channel pad -> 'SAME' zero pad -> flatten ->
    # lane pad to a 128 multiple -> fold batch onto lanes.
    xp = jnp.pad(x_nchw, ((0, 0), (0, CIN_PAD - Cin), (1, 1), (1, 1))).reshape(Bx, CIN_PAD, L)
    xp = jnp.pad(xp, ((0, 0), (0, 0), (0, Lp - L)))
    xe = jnp.transpose(xp, (1, 0, 2)).reshape(CIN_PAD, Ltot)

    # interior-frame mask (host-side numpy constant), tiled per batch
    rr, cc = np.divmod(np.arange(L), Wp)
    m = ((rr >= 1) & (rr <= Hx) & (cc >= 1) & (cc <= Wx)).astype(np.float32)
    mask = jnp.asarray(np.tile(np.pad(m, (0, Lp - L)), Bx).reshape(1, Ltot))

    kern = functools.partial(_fused_kernel, nb=Bx, lp=Lp, wp=Wp)

    iam_pad, heads_all = pl.pallas_call(
        kern,
        out_shape=(jax.ShapeDtypeStruct((N_TOTAL, Ltot), jnp.float32),
                   jax.ShapeDtypeStruct((Bx * NUM_MASKS, SLAB_COLS), jnp.float32)),
        grid=(1,),
        in_specs=[pl.BlockSpec((CIN_PAD, Ltot), lambda i: (0, 0)),
                  pl.BlockSpec((1, Ltot), lambda i: (0, 0)),
                  pl.BlockSpec((SLAB_ROWS, SLAB_COLS), lambda i: (0, 0))],
        out_specs=(pl.BlockSpec((N_TOTAL, Ltot), lambda i: (0, 0)),
                   pl.BlockSpec((Bx * NUM_MASKS, SLAB_COLS), lambda i: (0, 0))),
        compiler_params=pltpu.CompilerParams(dimension_semantics=("arbitrary",)),
    )(xe, mask, slab)

    # iam lanes are [batch0 | batch1] over the padded frame; keep the interior.
    iam = jnp.transpose(iam_pad.reshape(N_TOTAL, Bx, Lp)[:, :, :L], (1, 0, 2))
    iam = iam.reshape(Bx, N_TOTAL, Hp, Wp)[:, :, 1:Hx + 1, 1:Wx + 1]

    heads  = heads_all.reshape(Bx, NUM_MASKS, SLAB_COLS)
    logits = heads[:, :, :NUM_CLASSES]
    kernv  = heads[:, :, NUM_CLASSES:NUM_CLASSES + KERNEL_DIM]
    scores = heads[:, :, NUM_CLASSES + KERNEL_DIM:NUM_CLASSES + KERNEL_DIM + 1]
    return logits, kernv, scores, iam


# ================================ parameters ================================
def _im2col_weight(w_hwio):
    """HWIO (3,3,Cin,Cout) -> transposed im2col weight (Cout, 9*Cin)."""
    kh, kw, cin, cout = w_hwio.shape
    w = jnp.transpose(w_hwio.reshape(kh * kw, cin, cout), (2, 0, 1))
    return w.reshape(cout, kh * kw * cin)


def init_params(key):
    ks = jax.random.split(key, 8)
    bias_value = -math.log((1.0 - PRIOR_PROB) / PRIOR_PROB)
    cg = DIM // NUM_GROUPS
    p = {}
    # inst_convs (msra-style std, zero bias)
    p['c1_w'] = jax.random.normal(ks[0], (3, 3, IN_CHANNELS, DIM), jnp.float32) * math.sqrt(2.0 / (9 * DIM))
    p['c1_b'] = jnp.zeros((DIM,), jnp.float32)
    p['c2_w'] = jax.random.normal(ks[1], (3, 3, DIM, DIM), jnp.float32) * math.sqrt(2.0 / (9 * DIM))
    p['c2_b'] = jnp.zeros((DIM,), jnp.float32)
    # grouped iam conv: HWIO with Cin/groups input channels, std=0.01, bias=prior
    p['iam_w_grouped'] = jax.random.normal(ks[2], (3, 3, cg, N_TOTAL), jnp.float32) * 0.01
    p['iam_b'] = jnp.full((N_TOTAL,), bias_value, jnp.float32)
    # block-diagonal dense equivalent of the grouped conv (mathematically identical)
    iam_w_full = jnp.zeros((3, 3, DIM, N_TOTAL), jnp.float32)
    for g in range(NUM_GROUPS):
        iam_w_full = iam_w_full.at[:, :, g * cg:(g + 1) * cg,
                                   g * NUM_MASKS:(g + 1) * NUM_MASKS].set(
            p['iam_w_grouped'][:, :, :, g * NUM_MASKS:(g + 1) * NUM_MASKS])
    # linear heads (weights stored already transposed: (in, out))
    E = EXPAND_DIM
    p['fc_w']  = jax.random.normal(ks[3], (E, E), jnp.float32) * math.sqrt(1.0 / E)
    p['fc_b']  = jnp.zeros((1, E), jnp.float32)
    p['cls_w'] = jax.random.normal(ks[4], (E, NUM_CLASSES), jnp.float32) * 0.01
    p['cls_b'] = jnp.full((1, NUM_CLASSES), bias_value, jnp.float32)
    p['mk_w']  = jax.random.normal(ks[5], (E, KERNEL_DIM), jnp.float32) * 0.01
    p['mk_b']  = jnp.zeros((1, KERNEL_DIM), jnp.float32)
    p['obj_w'] = jax.random.normal(ks[6], (E, 1), jnp.float32) * math.sqrt(1.0 / E)
    p['obj_b'] = jnp.zeros((1, 1), jnp.float32)

    # -------- single parameter slab for the kernel (built once, off the hot path) --------
    c1_w_pad = jnp.pad(p['c1_w'], ((0, 0), (0, 0), (0, CIN_PAD - IN_CHANNELS), (0, 0)))
    k_w1 = _im2col_weight(c1_w_pad)                                         # (DIM,  K1)
    k_w2 = jnp.concatenate([_im2col_weight(p['c2_w']),
                            jnp.zeros((1, K2), jnp.float32)], axis=0)       # (DIM2, K2)
    b2aug = jnp.concatenate([p['c2_b'], jnp.ones((1,), jnp.float32)])       # ones channel bias
    k_wiam  = _im2col_weight(iam_w_full)                                    # (N, K2)
    k_whead = jnp.concatenate([p['cls_w'], p['mk_w'], p['obj_w']], axis=1)  # (E, 25)
    k_bhead = jnp.concatenate([p['cls_b'], p['mk_b'], p['obj_b']], axis=1)  # (1, 25)

    slab = jnp.zeros((SLAB_ROWS, SLAB_COLS), jnp.float32)
    slab = slab.at[R_W1:R_W1 + DIM, :K1].set(k_w1)
    slab = slab.at[R_W1:R_W1 + DIM, BIAS_COL].set(p['c1_b'])
    slab = slab.at[R_W2:R_W2 + DIM2, :K2].set(k_w2)
    slab = slab.at[R_W2:R_W2 + DIM2, BIAS_COL].set(b2aug)
    slab = slab.at[R_WIAM:R_WIAM + N_TOTAL, :K2].set(k_wiam)
    slab = slab.at[R_WIAM:R_WIAM + N_TOTAL, BIAS_COL].set(p['iam_b'])
    slab = slab.at[R_FC:R_FC + E, :E].set(p['fc_w'])
    slab = slab.at[R_WHEAD:R_WHEAD + E, :HEAD_OUT].set(k_whead)
    slab = slab.at[R_FCB, :E].set(p['fc_b'][0])
    slab = slab.at[R_BHEAD, :HEAD_OUT].set(k_bhead[0])
    p['slab'] = slab
    return p


# ======================= pure-JAX reference (for verification) =======================
def reference_forward(x_nchw, params):
    hp = jax.lax.Precision.HIGHEST
    x = jnp.transpose(x_nchw, (0, 2, 3, 1))
    f = x
    for wk, bk in (('c1_w', 'c1_b'), ('c2_w', 'c2_b')):
        f = jax.lax.conv_general_dilated(
            f, params[wk], (1, 1), 'SAME',
            dimension_numbers=('NHWC', 'HWIO', 'NHWC'), precision=hp) + params[bk]
        f = jnp.maximum(f, 0.0)
    iam = jax.lax.conv_general_dilated(
        f, params['iam_w_grouped'], (1, 1), 'SAME',
        dimension_numbers=('NHWC', 'HWIO', 'NHWC'),
        feature_group_count=NUM_GROUPS, precision=hp) + params['iam_b']
    Bx = x.shape[0]
    p = 1.0 / (1.0 + jnp.exp(-iam.reshape(Bx, HW, N_TOTAL)))
    denom = jnp.maximum(p.sum(axis=1, keepdims=True), 1e-6)
    p = p / denom
    inst = jnp.einsum('bpn,bpc->bnc', p, f.reshape(Bx, HW, DIM), precision=hp)
    g = jnp.transpose(inst.reshape(Bx, NUM_GROUPS, NUM_MASKS, DIM),
                      (0, 2, 1, 3)).reshape(Bx, NUM_MASKS, EXPAND_DIM)
    h = jnp.maximum(jnp.einsum('bme,ef->bmf', g, params['fc_w'], precision=hp) + params['fc_b'], 0.0)
    logits = jnp.einsum('bme,ec->bmc', h, params['cls_w'], precision=hp) + params['cls_b']
    kern = jnp.einsum('bme,ek->bmk', h, params['mk_w'], precision=hp) + params['mk_b']
    scores = jnp.einsum('bme,eo->bmo', h, params['obj_w'], precision=hp) + params['obj_b']
    return logits, kern, scores, jnp.transpose(iam, (0, 3, 1, 2))


if __name__ == "__main__":
    key = jax.random.PRNGKey(0)
    pkey, xkey = jax.random.split(key)
    params = init_params(pkey)
    x = jax.random.normal(xkey, (B, IN_CHANNELS, H, W), jnp.float32)   # NCHW like PyTorch

    outs = group_instance_branch_forward(x, params['slab'])
    outs = jax.block_until_ready(outs)

    ref = reference_forward(x, params)
    names = ("pred_logits", "pred_kernel", "pred_scores", "iam")
    for name, a, b in zip(names, outs, ref):
        assert a.shape == b.shape, (name, a.shape, b.shape)
        err = float(jnp.max(jnp.abs(a - b)))
        # approx EUP reciprocals (perf review) -> slightly looser tolerance than the
        # exact-divide variant, still orders of magnitude below any real failure.
        assert jnp.allclose(a, b, atol=2e-3, rtol=2e-3), (name, err)

    print("KERNEL_OK")
</pallas_src>

<mosaic_0001>
module attributes {stable_mosaic.version = 11 : i64} {
  func.func @_fused_kernel(%arg0: i32, %arg1: memref<8x768xf32, #tpu.memory_space<vmem>>, %arg2: memref<1x768xf32, #tpu.memory_space<vmem>>, %arg3: memref<128x128xf32, #tpu.memory_space<vmem>>, %arg4: memref<32x768xf32, #tpu.memory_space<vmem>>, %arg5: memref<16x128xf32, #tpu.memory_space<vmem>>) attributes {dimension_semantics = [#tpu.dimension_semantics<arbitrary>], iteration_bounds = array<i64: 1>, scalar_prefetch = 0 : i64, scratch_operands = 0 : i64, tpu.core_type = #tpu.core_type<tc>, window_params = [{pipeline_mode = #tpu.pipeline_mode<synchronous>, transform_indices = @transform_0, window_bounds = array<i64: 8, 768>}, {pipeline_mode = #tpu.pipeline_mode<synchronous>, transform_indices = @transform_1, window_bounds = array<i64: 1, 768>}, {pipeline_mode = #tpu.pipeline_mode<synchronous>, transform_indices = @transform_2, window_bounds = array<i64: 128, 128>}, {pipeline_mode = #tpu.pipeline_mode<synchronous>, transform_indices = @transform_3, window_bounds = array<i64: 32, 768>}, {pipeline_mode = #tpu.pipeline_mode<synchronous>, transform_indices = @transform_4, window_bounds = array<i64: 16, 128>}]} {
    %c0 = arith.constant 0 : index
    %c0_0 = arith.constant 0 : index
    %0 = vector.load %arg2[%c0, %c0_0] : memref<1x768xf32, #tpu.memory_space<vmem>>, vector<1x768xf32>
    %c0_1 = arith.constant 0 : index
    %c0_2 = arith.constant 0 : index
    %1 = vector.load %arg3[%c0_1, %c0_2] : memref<128x128xf32, #tpu.memory_space<vmem>>, vector<8x128xf32>
    %c8 = arith.constant 8 : index
    %c0_3 = arith.constant 0 : index
    %2 = vector.load %arg3[%c8, %c0_3] : memref<128x128xf32, #tpu.memory_space<vmem>>, vector<9x128xf32>
    %c24 = arith.constant 24 : index
    %c0_4 = arith.constant 0 : index
    %3 = vector.load %arg3[%c24, %c0_4] : memref<128x128xf32, #tpu.memory_space<vmem>>, vector<32x128xf32>
    %4 = vector.extract_strided_slice %1 {offsets = [0, 0], sizes = [8, 72], strides = [1, 1]} : vector<8x128xf32> to vector<8x72xf32>
    %5 = vector.extract_strided_slice %1 {offsets = [0, 72], sizes = [8, 1], strides = [1, 1]} : vector<8x128xf32> to vector<8x1xf32>
    %6 = vector.extract_strided_slice %2 {offsets = [0, 0], sizes = [9, 72], strides = [1, 1]} : vector<9x128xf32> to vector<9x72xf32>
    %7 = vector.extract_strided_slice %2 {offsets = [0, 72], sizes = [9, 1], strides = [1, 1]} : vector<9x128xf32> to vector<9x1xf32>
    %8 = vector.extract_strided_slice %3 {offsets = [0, 0], sizes = [32, 72], strides = [1, 1]} : vector<32x128xf32> to vector<32x72xf32>
    %9 = vector.extract_strided_slice %3 {offsets = [0, 72], sizes = [32, 1], strides = [1, 1]} : vector<32x128xf32> to vector<32x1xf32>
    %c56 = arith.constant 56 : index
    %c0_5 = arith.constant 0 : index
    %10 = vector.load %arg3[%c56, %c0_5] : memref<128x128xf32, #tpu.memory_space<vmem>>, vector<32x128xf32>
    %11 = vector.extract_strided_slice %10 {offsets = [0, 0], sizes = [32, 32], strides = [1, 1]} : vector<32x128xf32> to vector<32x32xf32>
    %c88 = arith.constant 88 : index
    %c0_6 = arith.constant 0 : index
    %12 = vector.load %arg3[%c88, %c0_6] : memref<128x128xf32, #tpu.memory_space<vmem>>, vector<32x128xf32>
    %c120 = arith.constant 120 : index
    %c0_7 = arith.constant 0 : index
    %13 = vector.load %arg3[%c120, %c0_7] : memref<128x128xf32, #tpu.memory_space<vmem>>, vector<1x128xf32>
    %14 = vector.extract_strided_slice %13 {offsets = [0, 0], sizes = [1, 32], strides = [1, 1]} : vector<1x128xf32> to vector<1x32xf32>
    %c121 = arith.constant 121 : index
    %c0_8 = arith.constant 0 : index
    %15 = vector.load %arg3[%c121, %c0_8] : memref<128x128xf32, #tpu.memory_space<vmem>>, vector<1x128xf32>
    %c0_9 = arith.constant 0 : index
    %c0_10 = arith.constant 0 : index
    %16 = vector.load %arg1[%c0_9, %c0_10] : memref<8x768xf32, #tpu.memory_space<vmem>>, vector<8x768xf32>
    %c19_i32 = arith.constant 19 : i32
    %17 = tpu.dynamic_rotate %16 by %c19_i32 dim 1 : vector<8x768xf32>, i32 -> vector<8x768xf32>
    %c18_i32 = arith.constant 18 : i32
    %18 = tpu.dynamic_rotate %16 by %c18_i32 dim 1 : vector<8x768xf32>, i32 -> vector<8x768xf32>
    %c17_i32 = arith.constant 17 : i32
    %19 = tpu.dynamic_rotate %16 by %c17_i32 dim 1 : vector<8x768xf32>, i32 -> vector<8x768xf32>
    %c1_i32 = arith.constant 1 : i32
    %20 = tpu.dynamic_rotate %16 by %c1_i32 dim 1 : vector<8x768xf32>, i32 -> vector<8x768xf32>
    %c767_i32 = arith.constant 767 : i32
    %21 = tpu.dynamic_rotate %16 by %c767_i32 dim 1 : vector<8x768xf32>, i32 -> vector<8x768xf32>
    %c751_i32 = arith.constant 751 : i32
    %22 = tpu.dynamic_rotate %16 by %c751_i32 dim 1 : vector<8x768xf32>, i32 -> vector<8x768xf32>
    %c750_i32 = arith.constant 750 : i32
    %23 = tpu.dynamic_rotate %16 by %c750_i32 dim 1 : vector<8x768xf32>, i32 -> vector<8x768xf32>
    %c749_i32 = arith.constant 749 : i32
    %24 = tpu.dynamic_rotate %16 by %c749_i32 dim 1 : vector<8x768xf32>, i32 -> vector<8x768xf32>
    %25 = tpu.concatenate %17, %18, %19, %20, %16, %21, %22, %23, %24 in 0 : vector<8x768xf32>, vector<8x768xf32>, vector<8x768xf32>, vector<8x768xf32>, vector<8x768xf32>, vector<8x768xf32>, vector<8x768xf32>, vector<8x768xf32>, vector<8x768xf32> -> vector<72x768xf32>
    %cst = arith.constant dense<0.000000e+00> : vector<8x768xf32>
    %26 = tpu.matmul %4, %25, %cst {dimension_numbers = #tpu.dot_dimension_numbers<[1], [0], [0], [1], [0, 0, 1, 1], [], []>} : vector<8x72xf32>, vector<72x768xf32>, vector<8x768xf32> -> vector<8x768xf32>
    %27 = vector.broadcast %5 : vector<8x1xf32> to vector<8x768xf32>
    %28 = arith.addf %26, %27 : vector<8x768xf32>
    %cst_11 = arith.constant 0.000000e+00 : f32
    %29 = vector.broadcast %cst_11 : f32 to vector<8x768xf32>
    %30 = arith.maximumf %28, %29 : vector<8x768xf32>
    %31 = vector.broadcast %0 : vector<1x768xf32> to vector<8x768xf32>
    %32 = arith.mulf %30, %31 : vector<8x768xf32>
    %c19_i32_12 = arith.constant 19 : i32
    %33 = tpu.dynamic_rotate %32 by %c19_i32_12 dim 1 : vector<8x768xf32>, i32 -> vector<8x768xf32>
    %c18_i32_13 = arith.constant 18 : i32
    %34 = tpu.dynamic_rotate %32 by %c18_i32_13 dim 1 : vector<8x768xf32>, i32 -> vector<8x768xf32>
    %c17_i32_14 = arith.constant 17 : i32
    %35 = tpu.dynamic_rotate %32 by %c17_i32_14 dim 1 : vector<8x768xf32>, i32 -> vector<8x768xf32>
    %c1_i32_15 = arith.constant 1 : i32
    %36 = tpu.dynamic_rotate %32 by %c1_i32_15 dim 1 : vector<8x768xf32>, i32 -> vector<8x768xf32>
    %c767_i32_16 = arith.constant 767 : i32
    %37 = tpu.dynamic_rotate %32 by %c767_i32_16 dim 1 : vector<8x768xf32>, i32 -> vector<8x768xf32>
    %c751_i32_17 = arith.constant 751 : i32
    %38 = tpu.dynamic_rotate %32 by %c751_i32_17 dim 1 : vector<8x768xf32>, i32 -> vector<8x768xf32>
    %c750_i32_18 = arith.constant 750 : i32
    %39 = tpu.dynamic_rotate %32 by %c750_i32_18 dim 1 : vector<8x768xf32>, i32 -> vector<8x768xf32>
    %c749_i32_19 = arith.constant 749 : i32
    %40 = tpu.dynamic_rotate %32 by %c749_i32_19 dim 1 : vector<8x768xf32>, i32 -> vector<8x768xf32>
    %41 = tpu.concatenate %33, %34, %35, %36, %32, %37, %38, %39, %40 in 0 : vector<8x768xf32>, vector<8x768xf32>, vector<8x768xf32>, vector<8x768xf32>, vector<8x768xf32>, vector<8x768xf32>, vector<8x768xf32>, vector<8x768xf32>, vector<8x768xf32> -> vector<72x768xf32>
    %cst_20 = arith.constant dense<0.000000e+00> : vector<9x768xf32>
    %42 = tpu.matmul %6, %41, %cst_20 {dimension_numbers = #tpu.dot_dimension_numbers<[1], [0], [0], [1], [0, 0, 1, 1], [], []>} : vector<9x72xf32>, vector<72x768xf32>, vector<9x768xf32> -> vector<9x768xf32>
    %43 = vector.broadcast %7 : vector<9x1xf32> to vector<9x768xf32>
    %44 = arith.addf %42, %43 : vector<9x768xf32>
    %cst_21 = arith.constant 0.000000e+00 : f32
    %45 = vector.broadcast %cst_21 : f32 to vector<9x768xf32>
    %46 = arith.maximumf %44, %45 : vector<9x768xf32>
    %47 = vector.broadcast %0 : vector<1x768xf32> to vector<9x768xf32>
    %48 = arith.mulf %46, %47 : vector<9x768xf32>
    %49 = vector.extract_strided_slice %48 {offsets = [0, 0], sizes = [8, 768], strides = [1, 1]} : vector<9x768xf32> to vector<8x768xf32>
    %c19_i32_22 = arith.constant 19 : i32
    %50 = tpu.dynamic_rotate %49 by %c19_i32_22 dim 1 : vector<8x768xf32>, i32 -> vector<8x768xf32>
    %c18_i32_23 = arith.constant 18 : i32
    %51 = tpu.dynamic_rotate %49 by %c18_i32_23 dim 1 : vector<8x768xf32>, i32 -> vector<8x768xf32>
    %c17_i32_24 = arith.constant 17 : i32
    %52 = tpu.dynamic_rotate %49 by %c17_i32_24 dim 1 : vector<8x768xf32>, i32 -> vector<8x768xf32>
    %c1_i32_25 = arith.constant 1 : i32
    %53 = tpu.dynamic_rotate %49 by %c1_i32_25 dim 1 : vector<8x768xf32>, i32 -> vector<8x768xf32>
    %c767_i32_26 = arith.constant 767 : i32
    %54 = tpu.dynamic_rotate %49 by %c767_i32_26 dim 1 : vector<8x768xf32>, i32 -> vector<8x768xf32>
    %c751_i32_27 = arith.constant 751 : i32
    %55 = tpu.dynamic_rotate %49 by %c751_i32_27 dim 1 : vector<8x768xf32>, i32 -> vector<8x768xf32>
    %c750_i32_28 = arith.constant 750 : i32
    %56 = tpu.dynamic_rotate %49 by %c750_i32_28 dim 1 : vector<8x768xf32>, i32 -> vector<8x768xf32>
    %c749_i32_29 = arith.constant 749 : i32
    %57 = tpu.dynamic_rotate %49 by %c749_i32_29 dim 1 : vector<8x768xf32>, i32 -> vector<8x768xf32>
    %58 = tpu.concatenate %50, %51, %52, %53, %49, %54, %55, %56, %57 in 0 : vector<8x768xf32>, vector<8x768xf32>, vector<8x768xf32>, vector<8x768xf32>, vector<8x768xf32>, vector<8x768xf32>, vector<8x768xf32>, vector<8x768xf32>, vector<8x768xf32> -> vector<72x768xf32>
    %cst_30 = arith.constant dense<0.000000e+00> : vector<32x768xf32>
    %59 = tpu.matmul %8, %58, %cst_30 {dimension_numbers = #tpu.dot_dimension_numbers<[1], [0], [0], [1], [0, 0, 1, 1], [], []>} : vector<32x72xf32>, vector<72x768xf32>, vector<32x768xf32> -> vector<32x768xf32>
    %60 = vector.broadcast %9 : vector<32x1xf32> to vector<32x768xf32>
    %61 = arith.addf %59, %60 : vector<32x768xf32>
    %c0_31 = arith.constant 0 : index
    %c0_32 = arith.constant 0 : index
    %62 = vector.load %arg4[%c0_31, %c0_32] : memref<32x768xf32, #tpu.memory_space<vmem>>, vector<32x768xf32>
    tpu.vector_store %arg4[%c0_31, %c0_32], %61 {strides = array<i32>} : memref<32x768xf32, #tpu.memory_space<vmem>>, vector<32x768xf32>,
    %cst_33 = arith.constant 0.000000e+00 : f32
    %63 = vector.broadcast %cst_33 : f32 to vector<32x768xf32>
    %64 = arith.subf %63, %61 : vector<32x768xf32>
    %65 = math.exp %64 : vector<32x768xf32>
    %cst_34 = arith.constant 1.000000e+00 : f32
    %66 = vector.broadcast %cst_34 : f32 to vector<32x768xf32>
    %67 = arith.addf %66, %65 : vector<32x768xf32>
    %68 = tpu.reciprocal %67 {approx = true} : vector<32x768xf32> -> vector<32x768xf32>
    %69 = vector.broadcast %0 : vector<1x768xf32> to vector<32x768xf32>
    %70 = arith.mulf %68, %69 : vector<32x768xf32>
    %71 = vector.extract_strided_slice %70 {offsets = [0, 0], sizes = [32, 384], strides = [1, 1]} : vector<32x768xf32> to vector<32x384xf32>
    %72 = vector.extract_strided_slice %48 {offsets = [0, 0], sizes = [9, 384], strides = [1, 1]} : vector<9x768xf32> to vector<9x384xf32>
    %cst_35 = arith.constant dense<0.000000e+00> : vector<32x9xf32>
    %73 = tpu.matmul %71, %72, %cst_35 {dimension_numbers = #tpu.dot_dimension_numbers<[1], [1], [0], [0], [0, 0, 1, 0], [], []>} : vector<32x384xf32>, vector<9x384xf32>, vector<32x9xf32> -> vector<32x9xf32>
    %74 = vector.extract_strided_slice %73 {offsets = [0, 8], sizes = [32, 1], strides = [1, 1]} : vector<32x9xf32> to vector<32x1xf32>
    %cst_36 = arith.constant 9.99999997E-7 : f32
    %75 = vector.broadcast %cst_36 : f32 to vector<32x1xf32>
    %76 = arith.maximumf %74, %75 : vector<32x1xf32>
    %77 = tpu.reciprocal %76 {approx = true} : vector<32x1xf32> -> vector<32x1xf32>
    %78 = vector.extract_strided_slice %73 {offsets = [0, 0], sizes = [32, 8], strides = [1, 1]} : vector<32x9xf32> to vector<32x8xf32>
    %79 = vector.broadcast %77 : vector<32x1xf32> to vector<32x8xf32>
    %80 = arith.mulf %78, %79 : vector<32x8xf32>
    %81 = vector.extract_strided_slice %80 {offsets = [0, 0], sizes = [8, 8], strides = [1, 1]} : vector<32x8xf32> to vector<8x8xf32>
    %82 = vector.extract_strided_slice %80 {offsets = [8, 0], sizes = [8, 8], strides = [1, 1]} : vector<32x8xf32> to vector<8x8xf32>
    %83 = vector.extract_strided_slice %80 {offsets = [16, 0], sizes = [8, 8], strides = [1, 1]} : vector<32x8xf32> to vector<8x8xf32>
    %84 = vector.extract_strided_slice %80 {offsets = [24, 0], sizes = [8, 8], strides = [1, 1]} : vector<32x8xf32> to vector<8x8xf32>
    %85 = tpu.concatenate %81, %82, %83, %84 in 1 : vector<8x8xf32>, vector<8x8xf32>, vector<8x8xf32>, vector<8x8xf32> -> vector<8x32xf32>
    %86 = vector.extract_strided_slice %70 {offsets = [0, 384], sizes = [32, 384], strides = [1, 1]} : vector<32x768xf32> to vector<32x384xf32>
    %87 = vector.extract_strided_slice %48 {offsets = [0, 384], sizes = [9, 384], strides = [1, 1]} : vector<9x768xf32> to vector<9x384xf32>
    %cst_37 = arith.constant dense<0.000000e+00> : vector<32x9xf32>
    %88 = tpu.matmul %86, %87, %cst_37 {dimension_numbers = #tpu.dot_dimension_numbers<[1], [1], [0], [0], [0, 0, 1, 0], [], []>} : vector<32x384xf32>, vector<9x384xf32>, vector<32x9xf32> -> vector<32x9xf32>
    %89 = vector.extract_strided_slice %88 {offsets = [0, 8], sizes = [32, 1], strides = [1, 1]} : vector<32x9xf32> to vector<32x1xf32>
    %cst_38 = arith.constant 9.99999997E-7 : f32
    %90 = vector.broadcast %cst_38 : f32 to vector<32x1xf32>
    %91 = arith.maximumf %89, %90 : vector<32x1xf32>
    %92 = tpu.reciprocal %91 {approx = true} : vector<32x1xf32> -> vector<32x1xf32>
    %93 = vector.extract_strided_slice %88 {offsets = [0, 0], sizes = [32, 8], strides = [1, 1]} : vector<32x9xf32> to vector<32x8xf32>
    %94 = vector.broadcast %92 : vector<32x1xf32> to vector<32x8xf32>
    %95 = arith.mulf %93, %94 : vector<32x8xf32>
    %96 = vector.extract_strided_slice %95 {offsets = [0, 0], sizes = [8, 8], strides = [1, 1]} : vector<32x8xf32> to vector<8x8xf32>
    %97 = vector.extract_strided_slice %95 {offsets = [8, 0], sizes = [8, 8], strides = [1, 1]} : vector<32x8xf32> to vector<8x8xf32>
    %98 = vector.extract_strided_slice %95 {offsets = [16, 0], sizes = [8, 8], strides = [1, 1]} : vector<32x8xf32> to vector<8x8xf32>
    %99 = vector.extract_strided_slice %95 {offsets = [24, 0], sizes = [8, 8], strides = [1, 1]} : vector<32x8xf32> to vector<8x8xf32>
    %100 = tpu.concatenate %96, %97, %98, %99 in 1 : vector<8x8xf32>, vector<8x8xf32>, vector<8x8xf32>, vector<8x8xf32> -> vector<8x32xf32>
    %101 = tpu.concatenate %85, %100 in 0 : vector<8x32xf32>, vector<8x32xf32> -> vector<16x32xf32>
    %cst_39 = arith.constant dense<0.000000e+00> : vector<16x32xf32>
    %102 = tpu.matmul %101, %11, %cst_39 {dimension_numbers = #tpu.dot_dimension_numbers<[1], [0], [0], [1], [0, 0, 1, 1], [], []>} : vector<16x32xf32>, vector<32x32xf32>, vector<16x32xf32> -> vector<16x32xf32>
    %103 = vector.broadcast %14 : vector<1x32xf32> to vector<16x32xf32>
    %104 = arith.addf %102, %103 : vector<16x32xf32>
    %cst_40 = arith.constant 0.000000e+00 : f32
    %105 = vector.broadcast %cst_40 : f32 to vector<16x32xf32>
    %106 = arith.maximumf %104, %105 : vector<16x32xf32>
    %cst_41 = arith.constant dense<0.000000e+00> : vector<16x128xf32>
    %107 = tpu.matmul %106, %12, %cst_41 {dimension_numbers = #tpu.dot_dimension_numbers<[1], [0], [0], [1], [0, 0, 1, 1], [], []>} : vector<16x32xf32>, vector<32x128xf32>, vector<16x128xf32> -> vector<16x128xf32>
    %108 = vector.broadcast %15 : vector<1x128xf32> to vector<16x128xf32>
    %109 = arith.addf %107, %108 : vector<16x128xf32>
    %c0_42 = arith.constant 0 : index
    %c0_43 = arith.constant 0 : index
    %110 = vector.load %arg5[%c0_42, %c0_43] : memref<16x128xf32, #tpu.memory_space<vmem>>, vector<16x128xf32>
    tpu.vector_store %arg5[%c0_42, %c0_43], %109 {strides = array<i32>} : memref<16x128xf32, #tpu.memory_space<vmem>>, vector<16x128xf32>,
    return
  }
  func.func @transform_0(%arg0: i32) -> (i32, i32) {
    %c0_i32 = arith.constant 0 : i32
    %c0_i32_0 = arith.constant 0 : i32
    %c0_i32_1 = arith.constant 0 : i32
    return %c0_i32, %c0_i32_0 : i32, i32
  }
  func.func @transform_1(%arg0: i32) -> (i32, i32) {
    %c0_i32 = arith.constant 0 : i32
    %c0_i32_0 = arith.constant 0 : i32
    %c0_i32_1 = arith.constant 0 : i32
    return %c0_i32, %c0_i32_0 : i32, i32
  }
  func.func @transform_2(%arg0: i32) -> (i32, i32) {
    %c0_i32 = arith.constant 0 : i32
    %c0_i32_0 = arith.constant 0 : i32
    %c0_i32_1 = arith.constant 0 : i32
    return %c0_i32, %c0_i32_0 : i32, i32
  }
  func.func @transform_3(%arg0: i32) -> (i32, i32) {
    %c0_i32 = arith.constant 0 : i32
    %c0_i32_0 = arith.constant 0 : i32
    %c0_i32_1 = arith.constant 0 : i32
    return %c0_i32, %c0_i32_0 : i32, i32
  }
  func.func @transform_4(%arg0: i32) -> (i32, i32) {
    %c0_i32 = arith.constant 0 : i32
    %c0_i32_0 = arith.constant 0 : i32
    %c0_i32_1 = arith.constant 0 : i32
    return %c0_i32, %c0_i32_0 : i32, i32
  }
}

</mosaic_0001>

<bundles_post_ra>
// kernel: group_instance_branch_forward.1
= control target key start
LH: loop header
LB: loop body
LE: loop exit
PB: predicated region body
PF: predicated region fallthrough
CT: control target
= control target key end

     0   :  { %s2767_s23 = smov 19   ;;  %s2768_s24 = smov 18   ;;  %v4013_v9 = vmov 0.0   ;;  %v2776_v11 = vmov 72   ;;  %v52_v13 = vlaneseq  ;;  %vm199_vm8 = vcmask 588800   ;;  %s4008_s0 = inlined_call_operand.vmem [shape: f32[8,768], index: 0, kind: input, shape index: {}]   ;;  %s4009_s2 = inlined_call_operand.vmem [shape: f32[128,128], index: 2, kind: input, shape index: {}]   ;;  %s4010_s1 = inlined_call_operand.vmem [shape: f32[1,768], index: 1, kind: input, shape index: {}]   ;;  %s4011_s3 = inlined_call_operand.vmem [shape: f32[32,768], index: 3, kind: output, shape index: {0}]   ;;  %s4012_s4 = inlined_call_operand.vmem [shape: f32[16,128], index: 4, kind: output, shape index: {1}]  }
   0x1   :  { %v2809_v0 = vld [vmem:[%s4008_s0 + $0x20] sm:$0xff]  ;;  %v2814_v1 = vld [vmem:[%s4008_s0 + $0x28] sm:$0xff]  ;;  %s2769_s25 = smov 1   ;;  %s2770_s26 = smov 17   ;;  %v2839_v6 = vld [vmem:[%s4008_s0 + $0x10] sm:$0xff]  ;;  %266 = vmatprep.mubr.f32.mxu0 %v4013_v9  ;;  %337 = vmatprep.mubr.f32.mxu1 %v4013_v9  ;;  %vm1692_vm9 = vcmask 64512  }
   0x2   :  { %v2819_v2 = vld [vmem:[%s4008_s0] sm:$0xff]  ;;  %v2391_v3 = vpack.i.bf16 %v2809_v0, %v2814_v1  ;;  %v2826_v4 = vld [vmem:[%s4008_s0 + $0x8] sm:$0xff]  ;;  %s2771_s29 = smov 127   ;;  %s2772_s30 = smov 110   ;;  %v2857_v8 = vld [vmem:[%s4008_s0 + $0x18] sm:$0xff]  ;;  %2471 = vset.pattern.permute.xlu0 %v2776_v11  ;;  %2652 = vset.pattern.permute.xlu1 %v2776_v11  ;;  %v2899_v16 = vand.u32 127, %v52_v13 }
   0x3   :  { %v2381_v5 = vpack.i.bf16 %v2826_v4, %v2819_v2  ;;  %v2421_v7 = vpack.i.bf16 %v2839_v6, %v2826_v4  ;;  %s2773_s5 = smov 111   ;;  %s2775_s8 = smov 109   ;;  %v2441_v10 = vpack.i.bf16 %v2839_v6, %v2857_v8  ;;  %v2891_v12 = vld [vmem:[%s4009_s2] sm:$0xff]  ;;  %vm1694_vm10 = vcmask 130048  }
   0x4   :  { %2392 = vrot.lane.b32.xlu1 %v2391_v3, %s2767_s23  ;;  %vm54_vm0 = vcmp.lt.s32.totalorder %v2899_v16, 19  ;;  %vm73_vm1 = vcmp.lt.s32.totalorder %v2899_v16, 18  ;;  %vm92_vm2 = vcmp.lt.s32.totalorder %v2899_v16, 17  ;;  %vm111_vm3 = vcmp.lt.s32.totalorder %v2899_v16, 1  ;;  %s2780_s28 = smov 16  }
   0x5   :  { %2382 = vrot.lane.b32.xlu0 %v2381_v5, %s2767_s23  ;;  %vm130_vm4 = vcmp.lt.s32.totalorder %v2899_v16, 127  ;;  %vm168_vm5 = vcmp.lt.s32.totalorder %v2899_v16, 110  ;;  %vm149_vm6 = vcmp.lt.s32.totalorder %v2899_v16, 111  ;;  %vm187_vm7 = vcmp.lt.s32.totalorder %v2899_v16, 109 }
   0x6   :  { %vm1696_vm11 = vcmask 195584   ;;  %vm1919_vm12 = vcmask 261120  }
   0x8   :  { %2397 = vrot.lane.b32.xlu1 %v2391_v3, %s2768_s24 }
   0x9   :  { %2387 = vrot.lane.b32.xlu0 %v2381_v5, %s2768_s24 }
   0xc   :  { %2407 = vrot.lane.b32.xlu1 %v2381_v5, %s2769_s25 }
   0xd   :  { %2402 = vrot.lane.b32.xlu0 %v2381_v5, %s2770_s26 }
  0x10   :  { %2417 = vrot.lane.b32.xlu1 %v2391_v3, %s2769_s25 }
  0x11   :  { %2412 = vrot.lane.b32.xlu0 %v2391_v3, %s2770_s26 }
  0x14   :  { %118 = vrot.lane.b32.xlu1 %v2819_v2, %s2771_s29 }
  0x15   :  { %2422 = vrot.lane.b32.xlu0 %v2421_v7, %s2771_s29 }
  0x18   :  { %2432 = vrot.lane.b32.xlu1 %v2421_v7, %s2772_s30 }
  0x19   :  { %2427 = vrot.lane.b32.xlu0 %v2421_v7, %s2773_s5 }
  0x1c   :  { %156 = vrot.lane.b32.xlu1 %v2819_v2, %s2772_s30 }
  0x1d   :  { %137 = vrot.lane.b32.xlu0 %v2819_v2, %s2773_s5 }
  0x20   :  { %179 = vrot.lane.b32.xlu1 %v2839_v6, %s2775_s8 }
  0x21   :  { %177 = vrot.lane.b32.xlu0 %v2826_v4, %s2775_s8 }
  0x24   :  { %2442 = vrot.lane.b32.xlu1 %v2441_v10, %s2768_s24 }
  0x25   :  { %2437 = vrot.lane.b32.xlu0 %v2441_v10, %s2767_s23 }
  0x28   :  { %2447 = vrot.lane.b32.xlu1 %v2441_v10, %s2770_s26 }
  0x29   :  { %175 = vrot.lane.b32.xlu0 %v2819_v2, %s2775_s8 }
  0x2c   :  { %2457 = vrot.lane.b32.xlu1 %v2391_v3, %s2771_s29 }
  0x2d   :  { %2452 = vrot.lane.b32.xlu0 %v2441_v10, %s2769_s25 }
  0x30   :  { %2467 = vrot.lane.b32.xlu1 %v2391_v3, %s2772_s30 }
  0x31   :  { %2462 = vrot.lane.b32.xlu0 %v2391_v3, %s2773_s5 }
  0x34   :  { %185 = vrot.lane.b32.xlu1 %v2814_v1, %s2775_s8 }
  0x35   :  { %124 = vrot.lane.b32.xlu0 %v2857_v8, %s2771_s29 }
  0x38   :  { %143 = vrot.lane.b32.xlu1 %v2857_v8, %s2773_s5 }
  0x39   :  { %183 = vrot.lane.b32.xlu0 %v2809_v0, %s2775_s8 }
  0x3c   :  { %181 = vrot.lane.b32.xlu1 %v2857_v8, %s2775_s8 }
  0x3d   :  { %162 = vrot.lane.b32.xlu0 %v2857_v8, %s2772_s30 }
  0x41   :  { %196 = vperm.xlu0 %2471, %v2891_v12  }
  0x76   :  { %v2894_v14 = vpop.permute.xlu1 %2392 }
  0x77   :  { %v2896_v15 = vpop.permute.xlu0 %2382  ;;  %v2394_v17 = vunpack.i.l.bf16 %v2894_v14  ;;  %v2395_v11 = vunpack.i.h.bf16 %v2894_v14 }
  0x78   :  { %v2385_v18 = vunpack.i.h.bf16 %v2896_v15  ;;  %v2384_v19 = vunpack.i.l.bf16 %v2896_v15 }
  0x7a   :  { %v2904_v20 = vpop.permute.xlu1 %2397  ;;  %v59_v26 = vsel %vm54_vm0, %v2384_v19, %v2385_v18  ;;  %v60_v28 = vsel %vm54_vm0, %v2394_v17, %v2384_v19 }
  0x7b   :  { %v2399_v21 = vunpack.i.l.bf16 %v2904_v20  ;;  %v2907_v22 = vpop.permute.xlu0 %2387  ;;  %v2400_v19 = vunpack.i.h.bf16 %v2904_v20 }
  0x7c   :  { %v2390_v23 = vunpack.i.h.bf16 %v2907_v22  ;;  %v2389_v24 = vunpack.i.l.bf16 %v2907_v22 }
  0x7e   :  { %v2915_v25 = vpop.permute.xlu1 %2407  ;;  %v78_v27 = vsel %vm73_vm1, %v2389_v24, %v2390_v23  ;;  %v79_v29 = vsel %vm73_vm1, %v2399_v21, %v2389_v24 }
  0x7f   :  { %v2410_v30 = vunpack.i.h.bf16 %v2915_v25  ;;  %v2409_v31 = vunpack.i.l.bf16 %v2915_v25  ;;  %v2935_v32 = vpop.permute.xlu0 %2402  ;;  %v2191_v33 = vpack.c.bf16 %v78_v27, %v59_v26  ;;  %v2193_v34 = vpack.c.bf16 %v79_v29, %v60_v28 }
  0x80   :  { %v2405_v35 = vunpack.i.h.bf16 %v2935_v32  ;;  %v2404_v36 = vunpack.i.l.bf16 %v2935_v32 }
  0x81   :  { %2192 = vmatprep.subr.bf16.mxu0 %v2191_v33  ;;  %v116_v37 = vsel %vm111_vm3, %v2409_v31, %v2410_v30  ;;  %v55_v33 = vsel %vm54_vm0, %v2395_v11, %v2394_v17 }
  0x82   :  { %2194 = vmatpush1.bf16.msra.mxu0 %v2193_v34  ;;  %v2943_v38 = vpop.permute.xlu1 %2417  ;;  %v97_v39 = vsel %vm92_vm2, %v2404_v36, %v2405_v35  ;;  %v74_v34 = vsel %vm73_vm1, %v2400_v19, %v2399_v21 }
  0x83   :  { %v2419_v40 = vunpack.i.l.bf16 %v2943_v38  ;;  %v2950_v41 = vpop.permute.xlu0 %2412  ;;  %v2195_v42 = vpack.c.bf16 %v116_v37, %v97_v39 }
  0x84   :  { %v2414_v43 = vunpack.i.l.bf16 %v2950_v41  ;;  %v2415_v37 = vunpack.i.h.bf16 %v2950_v41 }
  0x85   :  { %2196 = vmatprep.subr.bf16.mxu0 %v2195_v42  ;;  %v117_v44 = vsel %vm111_vm3, %v2419_v40, %v2409_v31 }
  0x86   :  { %v2957_v45 = vpop.permute.xlu1 %118  ;;  %v98_v46 = vsel %vm92_vm2, %v2414_v43, %v2404_v36  ;;  %v2420_v36 = vunpack.i.h.bf16 %v2943_v38  ;;  %v93_v15 = vsel %vm92_vm2, %v2415_v37, %v2414_v43 }
  0x87   :  { %v2963_v47 = vpop.permute.xlu0 %2422  ;;  %v2197_v48 = vpack.c.bf16 %v117_v44, %v98_v46 }
  0x88   :  { %v2425_v49 = vunpack.i.h.bf16 %v2963_v47  ;;  %v2424_v50 = vunpack.i.l.bf16 %v2963_v47 }
  0x89   :  { %2198 = vmatpush1.bf16.msra.mxu0 %v2197_v48 }
  0x8a   :  { %v2968_v51 = vpop.permute.xlu1 %2432  ;;  %v134_v52 = vsel %vm130_vm4, %v2424_v50, %v2425_v49  ;;  %v135_v53 = vsel %vm130_vm4, %v2957_v45, %v2424_v50 }
  0x8b   :  { %v2435_v54 = vunpack.i.h.bf16 %v2968_v51  ;;  %v2434_v55 = vunpack.i.l.bf16 %v2968_v51  ;;  %v2981_v56 = vpop.permute.xlu0 %2427  ;;  %v2199_v57 = vpack.c.bf16 %v134_v52, %v2826_v4  ;;  %v2201_v58 = vpack.c.bf16 %v135_v53, %v2819_v2 }
  0x8c   :  { %v2430_v59 = vunpack.i.h.bf16 %v2981_v56  ;;  %v2429_v60 = vunpack.i.l.bf16 %v2981_v56 }
  0x8d   :  { %2200 = vmatprep.subr.bf16.mxu0 %v2199_v57  ;;  %v172_v61 = vsel %vm168_vm5, %v2434_v55, %v2435_v54 }
  0x8e   :  { %2202 = vmatpush1.bf16.msra.mxu0 %v2201_v58  ;;  %v2991_v62 = vpop.permute.xlu1 %156  ;;  %v153_v63 = vsel %vm149_vm6, %v2429_v60, %v2430_v59 }
  0x8f   :  { %v173_v2 = vsel %vm168_vm5, %v2991_v62, %v2434_v55  ;;  %v3000_v3 = vpop.permute.xlu0 %137  ;;  %v2203_v4 = vpack.c.bf16 %v172_v61, %v153_v63 }
  0x90   :  { %v154_v5 = vsel %vm149_vm6, %v3000_v3, %v2429_v60 }
  0x91   :  { %v2205_v7 = vpack.c.bf16 %v173_v2, %v154_v5  ;;  %2204 = vmatprep.subr.bf16.mxu0 %v2203_v4 }
  0x92   :  { %v3006_v10 = vpop.permute.xlu1 %179 }
  0x93   :  { %v178_v24 = vpop.permute.xlu0 %177  ;;  %2206 = vmatpush1.bf16.msra.mxu0 %v2205_v7 }
  0x94   :  { %v191_v26 = vsel %vm187_vm7, %v178_v24, %v3006_v10 }
  0x95   :  { %218 = vmatprep.subr.mxu0 %v191_v26 }
  0x96   :  { %v2443_v27 = vpop.permute.xlu1 %2442 }
  0x97   :  { %v2445_v28 = vunpack.i.h.bf16 %v2443_v27  ;;  %v2444_v29 = vunpack.i.l.bf16 %v2443_v27  ;;  %v2438_v31 = vpop.permute.xlu0 %2437 }
  0x98   :  { %v2440_v39 = vunpack.i.h.bf16 %v2438_v31  ;;  %v2439_v42 = vunpack.i.l.bf16 %v2438_v31 }
  0x99   :  { %v76_v44 = vsel %vm73_vm1, %v2445_v28, %v2444_v29  ;;  %v77_v14 = vsel %vm73_vm1, %v2390_v23, %v2445_v28  ;;  %v75_v46 = vsel %vm73_vm1, %v2444_v29, %v2400_v19  ;;  %v2223_v23 = vpack.c.bf16 %v74_v34, %v55_v33 }
  0x9a   :  { %v2448_v17 = vpop.permute.xlu1 %2447  ;;  %v57_v20 = vsel %vm54_vm0, %v2440_v39, %v2439_v42  ;;  %v58_v21 = vsel %vm54_vm0, %v2385_v18, %v2440_v39  ;;  %v56_v48 = vsel %vm54_vm0, %v2439_v42, %v2395_v11  ;;  %v112_v18 = vsel %vm111_vm3, %v2420_v36, %v2419_v40 }
  0x9b   :  { %v3039_v22 = vpop.permute.xlu0 %175  ;;  %v2207_v50 = vpack.c.bf16 %v76_v44, %v57_v20  ;;  %v2209_v53 = vpack.c.bf16 %v77_v14, %v58_v21  ;;  %v2450_v55 = vunpack.i.h.bf16 %v2448_v17  ;;  %v2449_v57 = vunpack.i.l.bf16 %v2448_v17 }
  0x9c   :  { %v192_v52 = vsel %vm187_vm7, %v3039_v22, %v178_v24  ;;  %v2225_v58 = vpack.c.bf16 %v75_v46, %v56_v48  ;;  %v2227_v41 = vpack.c.bf16 %v112_v18, %v93_v15  ;;  %v16_v18 = vld [vmem:[%s4010_s1] sm:$0x3f] }
  0x9d   :  { %219 = vmatpush1.msra.mxu0 %v192_v52  ;;  %2208 = vmatprep.subr.bf16.mxu1 %v2207_v50  ;;  %v95_v40 = vsel %vm92_vm2, %v2450_v55, %v2449_v57  ;;  %v94_v4 = vsel %vm92_vm2, %v2449_v57, %v2415_v37  ;;  %v96_v5 = vsel %vm92_vm2, %v2405_v35, %v2450_v55 }
  0x9e   :  { %2210 = vmatpush1.bf16.msra.mxu1 %v2209_v53  ;;  %2224 = vmatprep.subr.bf16.mxu0 %v2223_v23  ;;  %v2458_v60 = vpop.permute.xlu1 %2457 }
  0x9f   :  { %v2460_v61 = vunpack.i.h.bf16 %v2458_v60  ;;  %v2459_v63 = vunpack.i.l.bf16 %v2458_v60  ;;  %v2453_v2 = vpop.permute.xlu0 %2452  ;;  %2098 = vmatmul.mubr.msk.f32.vlgmr.msra.gmra.mrb[0].mxu0 %vm199_vm8, %v2891_v12 }
  0xa0   :  { %v2455_v43 = vunpack.i.h.bf16 %v2453_v2  ;;  %v2454_v38 = vunpack.i.l.bf16 %v2453_v2  ;;  %2226 = vmatpush1.bf16.msra.mxu0 %v2225_v58  ;;  %408 = vmatprep.mubr.f32.mxu0 %v4013_v9 }
  0xa1   :  { %2228 = vmatprep.subr.bf16.mxu0 %v2227_v41  ;;  %v136_v7 = vsel %vm130_vm4, %v2459_v63, %v2957_v45  ;;  %v131_v11 = vsel %vm130_vm4, %v2460_v61, %v2459_v63 }
  0xa2   :  { %v113_v19 = vsel %vm111_vm3, %v2454_v38, %v2420_v36  ;;  %v2468_v24 = vpop.permute.xlu1 %2467  ;;  %v114_v26 = vsel %vm111_vm3, %v2455_v43, %v2454_v38  ;;  %v115_v32 = vsel %vm111_vm3, %v2410_v30, %v2455_v43  ;;  %v2231_v37 = vpack.c.bf16 %v136_v7, %v2814_v1 }
  0xa3   :  { %v2229_v35 = vpack.c.bf16 %v113_v19, %v94_v4  ;;  %v2470_v27 = vunpack.i.h.bf16 %v2468_v24  ;;  %v2469_v28 = vunpack.i.l.bf16 %v2468_v24  ;;  %v2463_v29 = vpop.permute.xlu0 %2462  ;;  %v2211_v45 = vpack.c.bf16 %v114_v26, %v95_v40 }
  0xa4   :  { %v2465_v31 = vunpack.i.h.bf16 %v2463_v29  ;;  %v2464_v33 = vunpack.i.l.bf16 %v2463_v29  ;;  %v2213_v34 = vpack.c.bf16 %v115_v32, %v96_v5  ;;  %v2233_v36 = vpack.c.bf16 %v131_v11, %v2809_v0 }
  0xa5   :  { %2212 = vmatprep.subr.bf16.mxu1 %v2211_v45  ;;  %2230 = vmatpush1.bf16.msra.mxu0 %v2229_v35  ;;  %v174_v25 = vsel %vm168_vm5, %v2469_v28, %v2991_v62  ;;  %v169_v1 = vsel %vm168_vm5, %v2470_v27, %v2469_v28 }
  0xa6   :  { %2214 = vmatpush1.bf16.msra.mxu1 %v2213_v34  ;;  %2232 = vmatprep.subr.bf16.mxu0 %v2231_v37  ;;  %v186_v30 = vpop.permute.xlu1 %185  ;;  %v155_v39 = vsel %vm149_vm6, %v2464_v33, %v3000_v3  ;;  %v150_v0 = vsel %vm149_vm6, %v2465_v31, %v2464_v33 }
  0xa7   :  { %v125_v42 = vpop.permute.xlu0 %124  ;;  %v2235_v44 = vpack.c.bf16 %v174_v25, %v155_v39  ;;  %v2237_v20 = vpack.c.bf16 %v169_v1, %v150_v0  ;;  %v193_v48 = vsel %vm187_vm7, %v186_v30, %v3039_v22 }
  0xa8   :  { %v132_v14 = vsel %vm130_vm4, %v125_v42, %v2460_v61  ;;  %v133_v62 = vsel %vm130_vm4, %v2425_v49, %v125_v42 }
  0xa9   :  { %v2215_v17 = vpack.c.bf16 %v132_v14, %v2857_v8  ;;  %v2217_v3 = vpack.c.bf16 %v133_v62, %v2839_v6  ;;  %2234 = vmatpush1.bf16.msra.mxu0 %v2233_v36  ;;  %v3211_v14 = vld [vmem:[%s4009_s2 + $0x8] sm:$0xff] }
  0xaa   :  { %2236 = vmatprep.subr.bf16.mxu0 %v2235_v44  ;;  %v144_v21 = vpop.permute.xlu1 %143 }
  0xab   :  { %v184_v46 = vpop.permute.xlu0 %183  ;;  %2216 = vmatprep.subr.bf16.mxu1 %v2215_v17  ;;  %v151_v47 = vsel %vm149_vm6, %v144_v21, %v2465_v31  ;;  %v152_v6 = vsel %vm149_vm6, %v2430_v59, %v144_v21 }
  0xac   :  { %2218 = vmatpush1.bf16.msra.mxu1 %v2217_v3  ;;  %v188_v8 = vsel %vm187_vm7, %v184_v46, %v186_v30 }
  0xad   :  { %2238 = vmatpush1.bf16.msra.mxu0 %v2237_v20 }
  0xae   :  { %360 = vmatprep.subr.mxu0 %v193_v48  ;;  %v182_v23 = vpop.permute.xlu1 %181 }
  0xaf   :  { %v163_v49 = vpop.permute.xlu0 %162  ;;  %v189_v56 = vsel %vm187_vm7, %v182_v23, %v184_v46  ;;  %v190_v51 = vsel %vm187_vm7, %v3006_v10, %v182_v23 }
  0xb0   :  { %v170_v50 = vsel %vm168_vm5, %v163_v49, %v2470_v27  ;;  %v171_v22 = vsel %vm168_vm5, %v2435_v54, %v163_v49  ;;  %v423_v54 = vshrl.u32 %v52_v13, 7 }
  0xb1   :  { %v2219_v52 = vpack.c.bf16 %v170_v50, %v151_v47  ;;  %v2221_v53 = vpack.c.bf16 %v171_v22, %v152_v6  ;;  %361 = vmatpush1.msra.mxu0 %v188_v8 }
  0xb2   :  { %2100 = vmatmul.mubr.msk.f32.vlgmr.msra.gmra.mrb[2].mxu0 %vm199_vm8, %v2891_v12  ;;  %v424_v59 = vsub.s32 0, %v423_v54  ;;  %v428_v55 = vsub.s32 1, %v423_v54  ;;  %v440_v38 = vsub.s32 4, %v423_v54  ;;  %v444_v40 = vsub.s32 5, %v423_v54 }
  0xb3   :  { %2220 = vmatprep.subr.bf16.mxu1 %v2219_v52  ;;  %757 = vmatprep.mubr.f32.mxu0 %v4013_v9  ;;  %v432_v35 = vsub.s32 2, %v423_v54  ;;  %v436_v39 = vsub.s32 3, %v423_v54 }
  0xb4   :  { %2222 = vmatpush1.bf16.msra.mxu1 %v2221_v53  ;;  %v3128_v60 = vrot.slane %v16_v18, %v424_v59  ;;  %v3130_v63 = vrot.slane %v16_v18, %v428_v55  ;;  %v3146_v7 = vrot.slane %v16_v18, %v440_v38  ;;  %v3148_v24 = vrot.slane %v16_v18, %v444_v40 }
  0xb5   :  { %289 = vmatprep.subr.mxu1 %v189_v56  ;;  %v3156_v31 = vrot.slane %v16_v18, %v432_v35  ;;  %v3169_v44 = vrot.slane %v16_v18, %v436_v39 }
  0xb8   :  { %290 = vmatpush1.msra.mxu1 %v190_v51 }
  0xb9   :  { %2099 = vmatmul.mubr.msk.f32.vlgmr.msra.gmra.mrb[0].mxu1 %vm199_vm8, %v2891_v12 }
  0xba   :  { %680 = vmatprep.mubr.f32.mxu1 %v4013_v9 }
  0xc0   :  { %v197_v15 = vpop.permute.xlu0 %196 }
 0x172   :  { %v268_v57 = vpop.f32.mrb[0].mxu0 }
 0x173   :  { %v269_v58 = vadd.f32 %v268_v57, %v197_v15  ;;  %v270_v10 = vpop.f32.mrb[1].mxu0 }
 0x174   :  { %v271_v61 = vadd.f32 %v270_v10, %v197_v15 }
 0x175   :  { %v415_v12 = vmax.f32 %v269_v58, 0.0 }
 0x176   :  { %v416_v2 = vmax.f32 %v271_v61, 0.0 }
 0x177   :  { %v3133_v41 = vmul.f32 %v3128_v60, %v415_v12 }
 0x178   :  { %v3136_v13 = vmul.f32 %v3130_v63, %v416_v2 }
 0x179   :  { %530 = vrot.lane.b32.xlu1 %v3133_v41, %s2771_s29 }
 0x17a   :  { %v2472_v43 = vpack.i.bf16 %v3136_v13, %v3133_v41 }
 0x17c   :  { %2483 = vrot.lane.b32.xlu0 %v2472_v43, %s2770_s26 }
 0x17d   :  { %2473 = vrot.lane.b32.xlu1 %v2472_v43, %s2767_s23 }
 0x181   :  { %2478 = vrot.lane.b32.xlu1 %v2472_v43, %s2768_s24 }
 0x185   :  { %v410_v4 = vpop.f32.mrb[2].mxu0  ;;  %2488 = vrot.lane.b32.xlu1 %v2472_v43, %s2769_s25 }
 0x186   :  { %v411_v5 = vadd.f32 %v410_v4, %v197_v15  ;;  %v412_v11 = vpop.f32.mrb[3].mxu0 }
 0x187   :  { %v413_v19 = vadd.f32 %v412_v11, %v197_v15 }
 0x188   :  { %v419_v26 = vmax.f32 %v411_v5, 0.0 }
 0x189   :  { %v420_v32 = vmax.f32 %v413_v19, 0.0 }
 0x18a   :  { %v3151_v27 = vmul.f32 %v3146_v7, %v419_v26 }
 0x18b   :  { %v3154_v28 = vmul.f32 %v3148_v24, %v420_v32 }
 0x18c   :  { %v339_v29 = vpop.f32.mrb[0].mxu1 }
 0x18d   :  { %v340_v45 = vadd.f32 %v339_v29, %v197_v15  ;;  %v341_v33 = vpop.f32.mrb[1].mxu1  ;;  %v2507_v34 = vpack.i.bf16 %v3151_v27, %v3154_v28 }
 0x18e   :  { %v342_v30 = vadd.f32 %v341_v33, %v197_v15 }
 0x18f   :  { %v417_v37 = vmax.f32 %v340_v45, 0.0  ;;  %2508 = vrot.lane.b32.xlu1 %v2507_v34, %s2768_s24 }
 0x190   :  { %v418_v42 = vmax.f32 %v342_v30, 0.0 }
 0x191   :  { %v3162_v36 = vmul.f32 %v3156_v31, %v417_v37 }
 0x192   :  { %v3175_v1 = vmul.f32 %v3169_v44, %v418_v42 }
 0x193   :  { %2518 = vrot.lane.b32.xlu1 %v2507_v34, %s2769_s25  ;;  %v2492_v25 = vpack.i.bf16 %v3162_v36, %v3136_v13 }
 0x194   :  { %v2532_v0 = vpack.i.bf16 %v3162_v36, %v3175_v1 }
 0x195   :  { %2493 = vrot.lane.b32.xlu0 %v2492_v25, %s2771_s29 }
 0x197   :  { %2523 = vrot.lane.b32.xlu1 %v2492_v25, %s2772_s30 }
 0x199   :  { %2498 = vrot.lane.b32.xlu0 %v2492_v25, %s2773_s5 }
 0x19b   :  { %566 = vrot.lane.b32.xlu1 %v3133_v41, %s2772_s30 }
 0x19d   :  { %2503 = vrot.lane.b32.xlu0 %v2507_v34, %s2767_s23 }
 0x19f   :  { %588 = vrot.lane.b32.xlu1 %v3162_v36, %s2775_s8 }
 0x1a1   :  { %2513 = vrot.lane.b32.xlu0 %v2507_v34, %s2770_s26 }
 0x1a3   :  { %2533 = vrot.lane.b32.xlu1 %v2532_v0, %s2768_s24 }
 0x1a5   :  { %548 = vrot.lane.b32.xlu0 %v3133_v41, %s2773_s5 }
 0x1a7   :  { %2538 = vrot.lane.b32.xlu1 %v2532_v0, %s2770_s26 }
 0x1a9   :  { %586 = vrot.lane.b32.xlu0 %v3136_v13, %s2775_s8 }
 0x1ab   :  { %2548 = vrot.lane.b32.xlu1 %v2507_v34, %s2771_s29 }
 0x1ad   :  { %2528 = vrot.lane.b32.xlu0 %v2532_v0, %s2767_s23 }
 0x1af   :  { %2558 = vrot.lane.b32.xlu1 %v2507_v34, %s2772_s30 }
 0x1b1   :  { %584 = vrot.lane.b32.xlu0 %v3133_v41, %s2775_s8 }
 0x1b3   :  { %594 = vrot.lane.b32.xlu1 %v3154_v28, %s2775_s8 }
 0x1b5   :  { %2543 = vrot.lane.b32.xlu0 %v2532_v0, %s2769_s25 }
 0x1b7   :  { %554 = vrot.lane.b32.xlu1 %v3175_v1, %s2773_s5 }
 0x1b9   :  { %536 = vrot.lane.b32.xlu0 %v3175_v1, %s2771_s29 }
 0x1bb   :  { %590 = vrot.lane.b32.xlu1 %v3175_v1, %s2775_s8 }
 0x1bd   :  { %2553 = vrot.lane.b32.xlu0 %v2507_v34, %s2773_s5 }
 0x1c1   :  { %592 = vrot.lane.b32.xlu0 %v3151_v27, %s2775_s8 }
 0x1c5   :  { %572 = vrot.lane.b32.xlu0 %v3175_v1, %s2772_s30 }
 0x1c9   :  { %604 = vperm.xlu0 %2471, %v3211_v14  }
 0x1eb   :  { %v3214_v62 = vpop.permute.xlu1 %530 }
 0x1ee   :  { %v3236_v22 = vpop.permute.xlu0 %2483 }
 0x1ef   :  { %v3216_v17 = vpop.permute.xlu1 %2473  ;;  %v2486_v51 = vunpack.i.h.bf16 %v3236_v22  ;;  %v2485_v54 = vunpack.i.l.bf16 %v3236_v22 }
 0x1f0   :  { %v2476_v3 = vunpack.i.h.bf16 %v3216_v17  ;;  %v2475_v20 = vunpack.i.l.bf16 %v3216_v17 }
 0x1f1   :  { %v510_v2 = vsel %vm92_vm2, %v2485_v54, %v2486_v51 }
 0x1f2   :  { %v474_v47 = vsel %vm54_vm0, %v2475_v20, %v2476_v3 }
 0x1f3   :  { %v3220_v21 = vpop.permute.xlu1 %2478 }
 0x1f4   :  { %v2481_v46 = vunpack.i.h.bf16 %v3220_v21  ;;  %v2480_v48 = vunpack.i.l.bf16 %v3220_v21 }
 0x1f6   :  { %v492_v49 = vsel %vm73_vm1, %v2480_v48, %v2481_v46 }
 0x1f7   :  { %v2239_v6 = vpack.c.bf16 %v492_v49, %v474_v47  ;;  %v3232_v8 = vpop.permute.xlu1 %2488 }
 0x1f8   :  { %v2491_v59 = vunpack.i.h.bf16 %v3232_v8  ;;  %v2490_v15 = vunpack.i.l.bf16 %v3232_v8 }
 0x1f9   :  { %2240 = vmatprep.subr.bf16.mxu1 %v2239_v6 }
 0x1fa   :  { %v528_v43 = vsel %vm111_vm3, %v2490_v15, %v2491_v59 }
 0x1fb   :  { %v2243_v26 = vpack.c.bf16 %v528_v43, %v510_v2 }
 0x201   :  { %v3234_v50 = vpop.permute.xlu1 %2508 }
 0x202   :  { %v2510_v55 = vunpack.i.l.bf16 %v3234_v50 }
 0x204   :  { %v493_v38 = vsel %vm73_vm1, %v2510_v55, %v2480_v48 }
 0x205   :  { %v3238_v23 = vpop.permute.xlu1 %2518 }
 0x206   :  { %v2520_v40 = vunpack.i.l.bf16 %v3238_v23 }
 0x207   :  { %v3240_v52 = vpop.permute.xlu0 %2493 }
 0x208   :  { %v2496_v10 = vunpack.i.h.bf16 %v3240_v52  ;;  %v2495_v61 = vunpack.i.l.bf16 %v3240_v52  ;;  %v529_v45 = vsel %vm111_vm3, %v2520_v40, %v2490_v15 }
 0x209   :  { %v3242_v53 = vpop.permute.xlu1 %2523 }
 0x20a   :  { %v545_v29 = vsel %vm130_vm4, %v2495_v61, %v2496_v10  ;;  %v2526_v37 = vunpack.i.h.bf16 %v3242_v53  ;;  %v2525_v25 = vunpack.i.l.bf16 %v3242_v53  ;;  %v546_v42 = vsel %vm130_vm4, %v3214_v62, %v2495_v61 }
 0x20b   :  { %v3244_v56 = vpop.permute.xlu0 %2498  ;;  %v2247_v0 = vpack.c.bf16 %v545_v29, %v3136_v13  ;;  %v2249_v48 = vpack.c.bf16 %v546_v42, %v3133_v41  ;;  %v2511_v61 = vunpack.i.h.bf16 %v3234_v50 }
 0x20c   :  { %v2501_v32 = vunpack.i.h.bf16 %v3244_v56  ;;  %v2500_v35 = vunpack.i.l.bf16 %v3244_v56  ;;  %v581_v49 = vsel %vm168_vm5, %v2525_v25, %v2526_v37 }
 0x20d   :  { %v3250_v18 = vpop.permute.xlu1 %566 }
 0x20e   :  { %v582_v41 = vsel %vm168_vm5, %v3250_v18, %v2525_v25 }
 0x20f   :  { %v2504_v57 = vpop.permute.xlu0 %2503 }
 0x210   :  { %v2505_v58 = vunpack.i.l.bf16 %v2504_v57  ;;  %v2506_v15 = vunpack.i.h.bf16 %v2504_v57 }
 0x211   :  { %v3255_v12 = vpop.permute.xlu1 %588 }
 0x212   :  { %v475_v4 = vsel %vm54_vm0, %v2505_v58, %v2475_v20  ;;  %v563_v20 = vsel %vm149_vm6, %v2500_v35, %v2501_v32  ;;  %v470_v50 = vsel %vm54_vm0, %v2506_v15, %v2505_v58 }
 0x213   :  { %v2241_v5 = vpack.c.bf16 %v493_v38, %v475_v4  ;;  %v3270_v11 = vpop.permute.xlu0 %2513 }
 0x214   :  { %v2515_v19 = vunpack.i.l.bf16 %v3270_v11 }
 0x215   :  { %2242 = vmatpush1.bf16.msra.mxu1 %v2241_v5  ;;  %v2534_v34 = vpop.permute.xlu1 %2533  ;;  %v2516_v5 = vunpack.i.h.bf16 %v3270_v11 }
 0x216   :  { %v511_v33 = vsel %vm92_vm2, %v2515_v19, %v2485_v54  ;;  %2244 = vmatprep.subr.bf16.mxu1 %v2243_v26  ;;  %v2251_v54 = vpack.c.bf16 %v581_v49, %v563_v20  ;;  %v2536_v2 = vunpack.i.h.bf16 %v2534_v34  ;;  %v2535_v43 = vunpack.i.l.bf16 %v2534_v34 }
 0x217   :  { %v2245_v30 = vpack.c.bf16 %v529_v45, %v511_v33  ;;  %v3287_v39 = vpop.permute.xlu0 %548  ;;  %v488_v34 = vsel %vm73_vm1, %v2511_v61, %v2510_v55  ;;  %v506_v55 = vsel %vm92_vm2, %v2516_v5, %v2515_v19 }
 0x218   :  { %v564_v6 = vsel %vm149_vm6, %v3287_v39, %v2500_v35  ;;  %v2521_v35 = vunpack.i.h.bf16 %v3238_v23  ;;  %v491_v45 = vsel %vm73_vm1, %v2481_v46, %v2536_v2  ;;  %v490_v46 = vsel %vm73_vm1, %v2536_v2, %v2535_v43 }
 0x219   :  { %2246 = vmatpush1.bf16.msra.mxu1 %v2245_v30  ;;  %v2539_v13 = vpop.permute.xlu1 %2538  ;;  %v2253_v38 = vpack.c.bf16 %v582_v41, %v564_v6  ;;  %v2271_v42 = vpack.c.bf16 %v488_v34, %v470_v50 }
 0x21a   :  { %2248 = vmatprep.subr.bf16.mxu1 %v2247_v0  ;;  %v489_v0 = vsel %vm73_vm1, %v2535_v43, %v2511_v61  ;;  %v2541_v20 = vunpack.i.h.bf16 %v2539_v13 }
 0x21b   :  { %v587_v47 = vpop.permute.xlu0 %586 }
 0x21c   :  { %v599_v57 = vsel %vm187_vm7, %v587_v47, %v3255_v12  ;;  %v509_v23 = vsel %vm92_vm2, %v2486_v51, %v2541_v20 }
 0x21d   :  { %2250 = vmatpush1.bf16.msra.mxu1 %v2249_v48  ;;  %v2549_v33 = vpop.permute.xlu1 %2548  ;;  %v2540_v48 = vunpack.i.l.bf16 %v2539_v13  ;;  %v3350_v13 = vld [vmem:[%s4009_s2 + $0x10] sm:$0x1] }
 0x21e   :  { %2252 = vmatprep.subr.bf16.mxu1 %v2251_v54  ;;  %v2550_v49 = vunpack.i.l.bf16 %v2549_v33 }
 0x21f   :  { %v2529_v4 = vpop.permute.xlu0 %2528  ;;  %v508_v51 = vsel %vm92_vm2, %v2541_v20, %v2540_v48 }
 0x220   :  { %v2531_v26 = vunpack.i.h.bf16 %v2529_v4  ;;  %v2530_v29 = vunpack.i.l.bf16 %v2529_v4  ;;  %v547_v43 = vsel %vm130_vm4, %v2550_v49, %v3214_v62 }
 0x221   :  { %2254 = vmatpush1.bf16.msra.mxu1 %v2253_v38  ;;  %v2559_v2 = vpop.permute.xlu1 %2558 }
 0x222   :  { %v473_v11 = vsel %vm54_vm0, %v2476_v3, %v2531_v26  ;;  %632 = vmatprep.subr.mxu1 %v599_v57  ;;  %v471_v58 = vsel %vm54_vm0, %v2530_v29, %v2506_v15  ;;  %v472_v21 = vsel %vm54_vm0, %v2531_v26, %v2530_v29  ;;  %v2551_v15 = vunpack.i.h.bf16 %v2549_v33 }
 0x223   :  { %v2257_v25 = vpack.c.bf16 %v491_v45, %v473_v11  ;;  %v3328_v30 = vpop.permute.xlu0 %584  ;;  %v2255_v3 = vpack.c.bf16 %v490_v46, %v472_v21  ;;  %v2273_v6 = vpack.c.bf16 %v489_v0, %v471_v58  ;;  %v2279_v57 = vpack.c.bf16 %v547_v43, %v3154_v28 }
 0x224   :  { %v600_v17 = vsel %vm187_vm7, %v3328_v30, %v587_v47  ;;  %v524_v47 = vsel %vm111_vm3, %v2521_v35, %v2520_v40  ;;  %v507_v40 = vsel %vm92_vm2, %v2540_v48, %v2516_v5  ;;  %v542_v8 = vsel %vm130_vm4, %v2551_v15, %v2550_v49 }
 0x225   :  { %633 = vmatpush1.msra.mxu1 %v600_v17  ;;  %2256 = vmatprep.subr.bf16.mxu0 %v2255_v3  ;;  %v2275_v54 = vpack.c.bf16 %v524_v47, %v506_v55  ;;  %v2561_v45 = vunpack.i.h.bf16 %v2559_v2  ;;  %v2560_v33 = vunpack.i.l.bf16 %v2559_v2  ;;  %v2281_v11 = vpack.c.bf16 %v542_v8, %v3151_v27  ;;  %v595_v34 = vpop.permute.xlu1 %594 }
 0x226   :  { %2101 = vmatmul.mubr.msk.f32.vlgmr.msra.gmra.mrb[2].mxu1 %vm199_vm8, %v3211_v14  ;;  %2258 = vmatpush1.bf16.msra.mxu0 %v2257_v25 }
 0x227   :  { %2272 = vmatprep.subr.bf16.mxu1 %v2271_v42  ;;  %v2544_v19 = vpop.permute.xlu0 %2543  ;;  %686 = vmatprep.mubr.f32.mxu1 %v4013_v9  ;;  %v583_v27 = vsel %vm168_vm5, %v2560_v33, %v3250_v18  ;;  %v601_v42 = vsel %vm187_vm7, %v595_v34, %v3328_v30 }
 0x228   :  { %v2546_v61 = vunpack.i.h.bf16 %v2544_v19  ;;  %v2545_v41 = vunpack.i.l.bf16 %v2544_v19  ;;  %2274 = vmatpush1.bf16.msra.mxu1 %v2273_v6 }
 0x229   :  { %2276 = vmatprep.subr.bf16.mxu1 %v2275_v54  ;;  %v555_v3 = vpop.permute.xlu1 %554 }
 0x22a   :  { %v525_v38 = vsel %vm111_vm3, %v2545_v41, %v2521_v35  ;;  %v527_v22 = vsel %vm111_vm3, %v2491_v59, %v2546_v61  ;;  %v526_v4 = vsel %vm111_vm3, %v2546_v61, %v2545_v41  ;;  %2102 = vmatmul.mubr.msk.f32.gmra.mrb[4].mxu1 %vm199_vm8, %v3350_v13 }
 0x22b   :  { %v2261_v5 = vpack.c.bf16 %v527_v22, %v509_v23  ;;  %v2277_v26 = vpack.c.bf16 %v525_v38, %v507_v40  ;;  %v537_v62 = vpop.permute.xlu0 %536  ;;  %v2259_v29 = vpack.c.bf16 %v526_v4, %v508_v51  ;;  %834 = vmatprep.mubr.f32.mxu1 %v4013_v9 }
 0x22c   :  { %v543_v59 = vsel %vm130_vm4, %v537_v62, %v2551_v15  ;;  %v544_v50 = vsel %vm130_vm4, %v2496_v10, %v537_v62  ;;  %v578_v10 = vsel %vm168_vm5, %v2561_v45, %v2560_v33 }
 0x22d   :  { %v2263_v35 = vpack.c.bf16 %v543_v59, %v3175_v1  ;;  %2260 = vmatprep.subr.bf16.mxu0 %v2259_v29  ;;  %2278 = vmatpush1.bf16.msra.mxu1 %v2277_v26  ;;  %v2265_v28 = vpack.c.bf16 %v544_v50, %v3162_v36  ;;  %v591_v56 = vpop.permute.xlu1 %590 }
 0x22e   :  { %2262 = vmatpush1.bf16.msra.mxu0 %v2261_v5  ;;  %2280 = vmatprep.subr.bf16.mxu1 %v2279_v57  ;;  %v598_v53 = vsel %vm187_vm7, %v3255_v12, %v591_v56 }
 0x22f   :  { %v2554_v58 = vpop.permute.xlu0 %2553  ;;  %2264 = vmatprep.subr.bf16.mxu0 %v2263_v35 }
 0x230   :  { %v2556_v25 = vunpack.i.h.bf16 %v2554_v58  ;;  %v2555_v52 = vunpack.i.l.bf16 %v2554_v58 }
 0x231   :  { %2282 = vmatpush1.bf16.msra.mxu1 %v2281_v11 }
 0x232   :  { %v560_v1 = vsel %vm149_vm6, %v2556_v25, %v2555_v52  ;;  %2266 = vmatpush1.bf16.msra.mxu0 %v2265_v28  ;;  %v565_v21 = vsel %vm149_vm6, %v2555_v52, %v3287_v39  ;;  %v562_v39 = vsel %vm149_vm6, %v2501_v32, %v555_v3  ;;  %v561_v18 = vsel %vm149_vm6, %v555_v3, %v2556_v25  ;;  %v3508_v28 = vld [vmem:[%s4009_s2 + $0x18] sm:$0xff]  ;;  %v3513_v25 = vld [vmem:[%s4009_s2 + $0x20] sm:$0xff]  ;;  %v3520_v52 = vld [vmem:[%s4009_s2 + $0x28] sm:$0xff] }
 0x233   :  { %v2285_v46 = vpack.c.bf16 %v578_v10, %v560_v1  ;;  %v593_v36 = vpop.permute.xlu0 %592  ;;  %v2283_v17 = vpack.c.bf16 %v583_v27, %v565_v21  ;;  %v3525_v10 = vld [vmem:[%s4009_s2 + $0x30] sm:$0xff] }
 0x234   :  { %v596_v30 = vsel %vm187_vm7, %v593_v36, %v595_v34  ;;  %v597_v32 = vsel %vm187_vm7, %v591_v56, %v593_v36 }
 0x235   :  { %2284 = vmatprep.subr.bf16.mxu1 %v2283_v17 }
 0x236   :  { %2286 = vmatpush1.bf16.msra.mxu1 %v2285_v46 }
 0x237   :  { %v573_v55 = vpop.permute.xlu0 %572  ;;  %786 = vmatprep.subr.mxu1 %v601_v42 }
 0x238   :  { %v579_v0 = vsel %vm168_vm5, %v573_v55, %v2561_v45  ;;  %v580_v20 = vsel %vm168_vm5, %v2526_v37, %v573_v55 }
 0x239   :  { %v2267_v48 = vpack.c.bf16 %v579_v0, %v561_v18  ;;  %v2269_v49 = vpack.c.bf16 %v580_v20, %v562_v39 }
 0x23a   :  { %787 = vmatpush1.msra.mxu1 %v596_v30 }
 0x23b   :  { %2268 = vmatprep.subr.bf16.mxu0 %v2267_v48  ;;  %2105 = vmatmul.mubr.msk.f32.vlgmr.msra.gmra.mrb[6].mxu1 %vm199_vm8, %v3211_v14 }
 0x23c   :  { %2270 = vmatpush1.bf16.msra.mxu0 %v2269_v49  ;;  %840 = vmatprep.mubr.f32.mxu1 %v4013_v9 }
 0x23d   :  { %709 = vmatprep.subr.mxu0 %v597_v32 }
 0x23f   :  { %2106 = vmatmul.mubr.msk.f32.gmra.mrb[8].mxu1 %vm199_vm8, %v3350_v13 }
 0x240   :  { %710 = vmatpush1.msra.mxu0 %v598_v53  ;;  %1196 = vmatprep.mubr.f32.mxu1 %v4013_v9 }
 0x241   :  { %2103 = vmatmul.mubr.msk.f32.vlgmr.msra.gmra.mrb[4].mxu0 %vm199_vm8, %v3211_v14 }
 0x242   :  { %763 = vmatprep.mubr.f32.mxu0 %v4013_v9 }
 0x245   :  { %2104 = vmatmul.mubr.msk.f32.gmra.mrb[6].mxu0 %vm199_vm8, %v3350_v13 }
 0x246   :  { %1107 = vmatprep.mubr.f32.mxu0 %v4013_v9 }
 0x248   :  { %v605_v15 = vpop.permute.xlu0 %604 }
 0x2f9   :  { %v682_v37 = vpop.f32.mrb[2].mxu1 }
 0x2fa   :  { %v684_v6 = vpop.f32.mrb[3].mxu1  ;;  %v683_v61 = vadd.f32 %v682_v37, %v605_v15 }
 0x2fb   :  { %v685_v41 = vadd.f32 %v684_v6, %v605_v15 }
 0x2fc   :  { %v847_v40 = vmax.f32 %v683_v61, 0.0 }
 0x2fd   :  { %v3431_v47 = vpop.f32.mrb[4].mxu1  ;;  %v848_v43 = vmax.f32 %v685_v41, 0.0 }
 0x2fe   :  { %v3433_v12 = vpop.f32.mrb[5].mxu1  ;;  %v3436_v22 = vmul.f32 %v847_v40, %v3128_v60 }
 0x2ff   :  { %v3442_v4 = vmul.f32 %v848_v43, %v3130_v63 }
 0x301   :  { %v2572_v29 = vpack.i.bf16 %v3442_v4, %v3436_v22 }
 0x30e   :  { %v836_v19 = vpop.f32.mrb[6].mxu1 }
 0x30f   :  { %v838_v54 = vpop.f32.mrb[7].mxu1  ;;  %v837_v8 = vadd.f32 %v836_v19, %v605_v15 }
 0x310   :  { %v839_v50 = vadd.f32 %v838_v54, %v605_v15 }
 0x311   :  { %v851_v57 = vmax.f32 %v837_v8, 0.0 }
 0x312   :  { %v852_v33 = vmax.f32 %v839_v50, 0.0  ;;  %v3531_v21 = vpop.f32.mrb[8].mxu1 }
 0x313   :  { %v3460_v45 = vmul.f32 %v851_v57, %v3146_v7  ;;  %v3535_v46 = vpop.f32.mrb[9].mxu1 }
 0x314   :  { %v759_v23 = vpop.f32.mrb[4].mxu0  ;;  %v3467_v34 = vmul.f32 %v852_v33, %v3148_v24 }
 0x315   :  { %v761_v14 = vpop.f32.mrb[5].mxu0  ;;  %v760_v5 = vadd.f32 %v759_v23, %v605_v15 }
 0x316   :  { %v762_v2 = vadd.f32 %v761_v14, %v605_v15 }
 0x317   :  { %v849_v62 = vmax.f32 %v760_v5, 0.0 }
 0x318   :  { %v850_v38 = vmax.f32 %v762_v2, 0.0  ;;  %v3529_v1 = vpop.f32.mrb[6].mxu0 }
 0x319   :  { %v3453_v59 = vmul.f32 %v849_v62, %v3156_v31  ;;  %v3533_v27 = vpop.f32.mrb[7].mxu0 }
 0x31a   :  { %v3439_v51 = vmul.f32 %v850_v38, %v3169_v44 }
 0x31b   :  { %v2592_v35 = vpack.i.bf16 %v3453_v59, %v3442_v4  ;;  %v2622_v58 = vpack.i.bf16 %v3453_v59, %v3467_v34 }
 0x31c   :  { %v2567_v26 = vpack.i.bf16 %v3439_v51, %v3436_v22  ;;  %v2612_v11 = vpack.i.bf16 %v3460_v45, %v3439_v51 }
 0x31e   :  { %2568 = vrot.lane.b32.xlu1 %v2567_v26, %s2773_s5  ;;  %2563 = vrot.lane.b32.xlu0 %v2567_v26, %s2771_s29 }
 0x322   :  { %2573 = vrot.lane.b32.xlu1 %v2572_v29, %s2767_s23  ;;  %2578 = vrot.lane.b32.xlu0 %v2572_v29, %s2768_s24 }
 0x326   :  { %2583 = vrot.lane.b32.xlu1 %v2572_v29, %s2770_s26  ;;  %2588 = vrot.lane.b32.xlu0 %v2572_v29, %s2769_s25 }
 0x32a   :  { %2593 = vrot.lane.b32.xlu1 %v2592_v35, %s2771_s29  ;;  %2603 = vrot.lane.b32.xlu0 %v2592_v35, %s2772_s30 }
 0x32e   :  { %2598 = vrot.lane.b32.xlu1 %v2592_v35, %s2773_s5  ;;  %2613 = vrot.lane.b32.xlu0 %v2612_v11, %s2768_s24 }
 0x332   :  { %2608 = vrot.lane.b32.xlu1 %v2612_v11, %s2767_s23  ;;  %2623 = vrot.lane.b32.xlu0 %v2622_v58, %s2768_s24 }
 0x336   :  { %2618 = vrot.lane.b32.xlu1 %v2622_v58, %s2767_s23  ;;  %2633 = vrot.lane.b32.xlu0 %v2622_v58, %s2769_s25  ;;  %s2779_s23 = smov 24  }
 0x33a   :  { %2628 = vrot.lane.b32.xlu1 %v2622_v58, %s2770_s26  ;;  %979 = vrot.lane.b32.xlu0 %v3436_v22, %s2772_s30 }
 0x33e   :  { %2638 = vrot.lane.b32.xlu1 %v2612_v11, %s2770_s26  ;;  %2643 = vrot.lane.b32.xlu0 %v2612_v11, %s2769_s25 }
 0x342   :  { %999 = vrot.lane.b32.xlu1 %v3442_v4, %s2775_s8  ;;  %1001 = vrot.lane.b32.xlu0 %v3453_v59, %s2775_s8 }
 0x346   :  { %951 = vrot.lane.b32.xlu1 %v3460_v45, %s2771_s29  ;;  %997 = vrot.lane.b32.xlu0 %v3436_v22, %s2775_s8 }
 0x34a   :  { %969 = vrot.lane.b32.xlu1 %v3460_v45, %s2773_s5  ;;  %2648 = vrot.lane.b32.xlu0 %v2612_v11, %s2772_s30 }
 0x34e   :  { %1005 = vrot.lane.b32.xlu1 %v3460_v45, %s2775_s8  ;;  %1003 = vrot.lane.b32.xlu0 %v3439_v51, %s2775_s8 }
 0x352   :  { %953 = vrot.lane.b32.xlu1 %v3467_v34, %s2771_s29  ;;  %971 = vrot.lane.b32.xlu0 %v3467_v34, %s2773_s5 }
 0x356   :  { %989 = vrot.lane.b32.xlu1 %v3467_v34, %s2772_s30  ;;  %1007 = vrot.lane.b32.xlu0 %v3467_v34, %s2775_s8 }
 0x35a   :  { %1017 = vperm.xlu1 %2652, %v3508_v28   ;;  %1022 = vperm.xlu0 %2471, %v3513_v25  }
 0x35e   :  { %1027 = vperm.xlu1 %2652, %v3520_v52   ;;  %1032 = vperm.xlu0 %2471, %v3525_v10  }
 0x362   :  { %609 = vperm.xlu1 %2652, %v3350_v13  }
 0x390   :  { %v3538_v36 = vpop.permute.xlu1 %2568  ;;  %v3540_v17 = vpop.permute.xlu0 %2563 }
 0x394   :  { %v2574_v3 = vpop.permute.xlu1 %2573  ;;  %v2579_v42 = vpop.permute.xlu0 %2578 }
 0x395   :  { %v2576_v55 = vunpack.i.h.bf16 %v2574_v3  ;;  %v2575_v39 = vunpack.i.l.bf16 %v2574_v3  ;;  %v2581_v18 = vunpack.i.h.bf16 %v2579_v42  ;;  %v2580_v0 = vunpack.i.l.bf16 %v2579_v42 }
 0x397   :  { %v887_v20 = vsel %vm54_vm0, %v2575_v39, %v2576_v55  ;;  %v905_v30 = vsel %vm73_vm1, %v2580_v0, %v2581_v18 }
 0x398   :  { %v3546_v48 = vpop.permute.xlu1 %2583  ;;  %v3548_v49 = vpop.permute.xlu0 %2588  ;;  %v2287_v13 = vpack.c.bf16 %v905_v30, %v887_v20 }
 0x399   :  { %v2586_v6 = vunpack.i.h.bf16 %v3546_v48  ;;  %v2585_v19 = vunpack.i.l.bf16 %v3546_v48  ;;  %v2591_v61 = vunpack.i.h.bf16 %v3548_v49  ;;  %v2590_v41 = vunpack.i.l.bf16 %v3548_v49 }
 0x39a   :  { %2288 = vmatprep.subr.bf16.mxu0 %v2287_v13 }
 0x39b   :  { %v923_v43 = vsel %vm92_vm2, %v2585_v19, %v2586_v6  ;;  %v941_v62 = vsel %vm111_vm3, %v2590_v41, %v2591_v61 }
 0x39c   :  { %v3550_v56 = vpop.permute.xlu1 %2593  ;;  %v3552_v32 = vpop.permute.xlu0 %2603  ;;  %v2291_v48 = vpack.c.bf16 %v941_v62, %v923_v43 }
 0x39d   :  { %v2596_v38 = vunpack.i.h.bf16 %v3550_v56  ;;  %v2595_v29 = vunpack.i.l.bf16 %v3550_v56  ;;  %v2606_v62 = vunpack.i.h.bf16 %v3552_v32 }
 0x3a0   :  { %v3554_v53 = vpop.permute.xlu1 %2598  ;;  %v3556_v37 = vpop.permute.xlu0 %2613 }
 0x3a1   :  { %v4017_v8 = vunpack.i.l.bf16 %v3556_v37  ;;  %v4018_v49 = vunpack.i.h.bf16 %v3554_v53  ;;  %v2600_v13 = vunpack.i.l.bf16 %v3554_v53 }
 0x3a4   :  { %v3560_v54 = vpop.permute.xlu1 %2608  ;;  %v3562_v15 = vpop.permute.xlu0 %2623 }
 0x3a5   :  { %v2626_v23 = vunpack.i.h.bf16 %v3562_v15  ;;  %v4015_v14 = vunpack.i.l.bf16 %v3562_v15  ;;  %v2610_v57 = vunpack.i.l.bf16 %v3560_v54 }
 0x3a7   :  { %v904_v50 = vsel %vm73_vm1, %v2581_v18, %v2626_v23  ;;  %v906_v35 = vsel %vm73_vm1, %v4015_v14, %v2580_v0 }
 0x3a8   :  { %v3568_v40 = vpop.permute.xlu1 %2618  ;;  %v3570_v2 = vpop.permute.xlu0 %2633 }
 0x3a9   :  { %v2621_v5 = vunpack.i.h.bf16 %v3568_v40  ;;  %v2620_v26 = vunpack.i.l.bf16 %v3568_v40  ;;  %v2635_v58 = vunpack.i.l.bf16 %v3570_v2 }
 0x3ab   :  { %v886_v33 = vsel %vm54_vm0, %v2576_v55, %v2621_v5  ;;  %v888_v11 = vsel %vm54_vm0, %v2620_v26, %v2575_v39  ;;  %v885_v0 = vsel %vm54_vm0, %v2621_v5, %v2610_v57  ;;  %v903_v55 = vsel %vm73_vm1, %v2626_v23, %v4017_v8 }
 0x3ac   :  { %v2289_v3 = vpack.c.bf16 %v906_v35, %v888_v11  ;;  %v2305_v42 = vpack.c.bf16 %v904_v50, %v886_v33  ;;  %v3595_v20 = vpop.permute.xlu1 %2628  ;;  %v3597_v18 = vpop.permute.xlu0 %979  ;;  %v2303_v30 = vpack.c.bf16 %v903_v55, %v885_v0  ;;  %v958_v5 = vsel %vm130_vm4, %v2595_v29, %v2596_v38 }
 0x3ad   :  { %v2630_v39 = vunpack.i.l.bf16 %v3595_v20  ;;  %v2631_v50 = vunpack.i.h.bf16 %v3595_v20  ;;  %v4016_v35 = vunpack.i.l.bf16 %v3540_v17  ;;  %v942_v23 = vsel %vm111_vm3, %v2635_v58, %v2590_v41 }
 0x3ae   :  { %2290 = vmatpush1.bf16.msra.mxu0 %v2289_v3  ;;  %2304 = vmatprep.subr.bf16.mxu1 %v2303_v30  ;;  %v2605_v33 = vunpack.i.l.bf16 %v3552_v32  ;;  %v2636_v11 = vunpack.i.h.bf16 %v3570_v2 }
 0x3af   :  { %v924_v43 = vsel %vm92_vm2, %v2630_v39, %v2585_v19  ;;  %2292 = vmatprep.subr.bf16.mxu0 %v2291_v48  ;;  %2306 = vmatpush1.bf16.msra.mxu1 %v2305_v42  ;;  %v959_v41 = vsel %vm130_vm4, %v4016_v35, %v2595_v29  ;;  %v2295_v19 = vpack.c.bf16 %v958_v5, %v3442_v4  ;;  %v2570_v35 = vunpack.i.l.bf16 %v3538_v36 }
 0x3b0   :  { %v2293_v3 = vpack.c.bf16 %v942_v23, %v924_v43  ;;  %v2639_v0 = vpop.permute.xlu1 %2638  ;;  %v2644_v55 = vpop.permute.xlu0 %2643  ;;  %v922_v30 = vsel %vm92_vm2, %v2586_v6, %v2631_v50  ;;  %v976_v42 = vsel %vm149_vm6, %v2600_v13, %v4018_v49  ;;  %v2297_v23 = vpack.c.bf16 %v959_v41, %v3436_v22 }
 0x3b1   :  { %v2640_v9 = vunpack.i.l.bf16 %v2639_v0  ;;  %v2645_v14 = vunpack.i.l.bf16 %v2644_v55  ;;  %v940_v5 = vsel %vm111_vm3, %v2591_v61, %v2636_v11  ;;  %v995_v8 = vsel %vm168_vm5, %v3597_v18, %v2605_v33 }
 0x3b2   :  { %2294 = vmatpush1.bf16.msra.mxu0 %v2293_v3  ;;  %v2566_v49 = vunpack.i.h.bf16 %v3540_v17  ;;  %v2611_v61 = vunpack.i.h.bf16 %v3560_v54  ;;  %v4020_v54 = vunpack.i.l.bf16 %v3556_v37 }
 0x3b3   :  { %2296 = vmatprep.subr.bf16.mxu0 %v2295_v19  ;;  %v921_v48 = vsel %vm92_vm2, %v2631_v50, %v2640_v9  ;;  %v939_v29 = vsel %vm111_vm3, %v2636_v11, %v2645_v14  ;;  %v994_v19 = vsel %vm168_vm5, %v2605_v33, %v2606_v62  ;;  %v2309_v50 = vpack.c.bf16 %v940_v5, %v922_v30 }
 0x3b4   :  { %v1000_v43 = vpop.permute.xlu1 %999  ;;  %v3645_v6 = vpop.permute.xlu0 %1001  ;;  %v2307_v3 = vpack.c.bf16 %v939_v29, %v921_v48  ;;  %v2299_v41 = vpack.c.bf16 %v994_v19, %v976_v42  ;;  %v977_v11 = vsel %vm149_vm6, %v2570_v35, %v2600_v13  ;;  %v2641_v48 = vunpack.i.h.bf16 %v2639_v0 }
 0x3b5   :  { %v2646_v29 = vunpack.i.h.bf16 %v2644_v55  ;;  %v957_v33 = vsel %vm130_vm4, %v2596_v38, %v2566_v49  ;;  %v2616_v30 = vunpack.i.h.bf16 %v3556_v37  ;;  %v2301_v42 = vpack.c.bf16 %v995_v8, %v977_v11 }
 0x3b6   :  { %2298 = vmatpush1.bf16.msra.mxu0 %v2297_v23  ;;  %2308 = vmatprep.subr.bf16.mxu1 %v2307_v3  ;;  %v2571_v13 = vunpack.i.h.bf16 %v3538_v36  ;;  %v1012_v56 = vsel %vm187_vm7, %v1000_v43, %v3645_v6  ;;  %v883_v38 = vsel %vm54_vm0, %v2611_v61, %v2620_v26  ;;  %v2313_v8 = vpack.c.bf16 %v957_v33, %v3453_v59 }
 0x3b7   :  { %2300 = vmatprep.subr.bf16.mxu0 %v2299_v41  ;;  %2310 = vmatpush1.bf16.msra.mxu1 %v2309_v50  ;;  %v919_v55 = vsel %vm92_vm2, %v2641_v48, %v2630_v39  ;;  %v937_v40 = vsel %vm111_vm3, %v2646_v29, %v2635_v58  ;;  %v4019_v26 = vunpack.i.h.bf16 %v3554_v53  ;;  %v4021_v39 = vunpack.i.l.bf16 %v3562_v15 }
 0x3b8   :  { %v952_v23 = vpop.permute.xlu1 %951  ;;  %v3666_v5 = vpop.permute.xlu0 %997  ;;  %v920_v11 = vsel %vm92_vm2, %v2640_v9, %v2641_v48  ;;  %v938_v33 = vsel %vm111_vm3, %v2645_v14, %v2646_v29  ;;  %v2323_v15 = vpack.c.bf16 %v937_v40, %v919_v55  ;;  %v4022_v29 = vmov 0.0  }
 0x3b9   :  { %v956_v3 = vsel %vm130_vm4, %v2566_v49, %v952_v23  ;;  %v884_v49 = vsel %vm54_vm0, %v2610_v57, %v2611_v61  ;;  %v975_v19 = vsel %vm149_vm6, %v4019_v26, %v2571_v13  ;;  %v902_v57 = vsel %vm73_vm1, %v4020_v54, %v2616_v30 }
 0x3ba   :  { %v2311_v0 = vpack.c.bf16 %v956_v3, %v3439_v51  ;;  %2302 = vmatpush1.bf16.msra.mxu0 %v2301_v42  ;;  %v901_v2 = vsel %vm73_vm1, %v2616_v30, %v4021_v39  ;;  %v1013_v53 = vsel %vm187_vm7, %v3666_v5, %v1000_v43  ;;  %v2321_v37 = vpack.c.bf16 %v902_v57, %v884_v49 }
 0x3bb   :  { %1059 = vmatprep.subr.mxu0 %v1012_v56  ;;  %v2319_v61 = vpack.c.bf16 %v901_v2, %v883_v38  ;;  %v4023_v38 = vunpack.i.l.bf16 %v3540_v17 }
 0x3bc   :  { %v970_v50 = vpop.permute.xlu1 %969  ;;  %v2649_v20 = vpop.permute.xlu0 %2648  ;;  %2312 = vmatprep.subr.bf16.mxu1 %v2311_v0 }
 0x3bd   :  { %v2651_v58 = vunpack.i.h.bf16 %v2649_v20  ;;  %v2650_v41 = vunpack.i.l.bf16 %v2649_v20  ;;  %2314 = vmatpush1.bf16.msra.mxu1 %v2313_v8  ;;  %v974_v30 = vsel %vm149_vm6, %v2571_v13, %v970_v50  ;;  %v2325_v13 = vpack.c.bf16 %v938_v33, %v920_v11 }
 0x3be   :  { %1060 = vmatpush1.msra.mxu0 %v1013_v53 }
 0x3bf   :  { %v993_v43 = vsel %vm168_vm5, %v2606_v62, %v2650_v41  ;;  %2107 = vmatmul.mubr.msk.f32.vlgmr.msra.gmra.mrb[8].mxu0 %vm199_vm8, %v3508_v28  ;;  %2320 = vmatprep.subr.bf16.mxu0 %v2319_v61  ;;  %v992_v9 = vsel %vm168_vm5, %v2650_v41, %v2651_v58 }
 0x3c0   :  { %v2317_v48 = vpack.c.bf16 %v993_v43, %v975_v19  ;;  %v1006_v42 = vpop.permute.xlu1 %1005  ;;  %v1004_v14 = vpop.permute.xlu0 %1003  ;;  %2322 = vmatpush1.bf16.msra.mxu0 %v2321_v37  ;;  %1113 = vmatprep.mubr.f32.mxu0 %v4022_v29  ;;  %v2315_v3 = vpack.c.bf16 %v992_v9, %v974_v30 }
 0x3c1   :  { %2324 = vmatprep.subr.bf16.mxu0 %v2323_v15  ;;  %v1010_v32 = vsel %vm187_vm7, %v1004_v14, %v1006_v42  ;;  %v1011_v49 = vsel %vm187_vm7, %v3645_v6, %v1004_v14 }
 0x3c2   :  { %2316 = vmatprep.subr.bf16.mxu1 %v2315_v3 }
 0x3c3   :  { %2108 = vmatmul.mubr.msk.f32.gmra.mrb[10].mxu0 %vm199_vm8, %v3513_v25  ;;  %2318 = vmatpush1.bf16.msra.mxu1 %v2317_v48 }
 0x3c4   :  { %v954_v62 = vpop.permute.xlu1 %953  ;;  %v972_v0 = vpop.permute.xlu0 %971  ;;  %1148 = vmatprep.subr.mxu1 %v1010_v32  ;;  %2326 = vmatpush1.bf16.msra.mxu0 %v2325_v13 }
 0x3c5   :  { %v955_v56 = vsel %vm130_vm4, %v952_v23, %v954_v62  ;;  %v960_v8 = vsel %vm130_vm4, %v954_v62, %v4023_v38  ;;  %1119 = vmatprep.mubr.f32.mxu0 %v4022_v29  ;;  %v973_v17 = vsel %vm149_vm6, %v970_v50, %v972_v0  ;;  %v978_v6 = vsel %vm149_vm6, %v972_v0, %v2570_v35 }
 0x3c6   :  { %v2327_v55 = vpack.c.bf16 %v960_v8, %v3467_v34  ;;  %v2329_v40 = vpack.c.bf16 %v955_v56, %v3460_v45 }
 0x3c7   :  { %2109 = vmatmul.mubr.msk.f32.gmra.mrb[12].mxu0 %vm199_vm8, %v3520_v52  ;;  %1149 = vmatpush1.msra.mxu1 %v1011_v49 }
 0x3c8   :  { %v990_v23 = vpop.permute.xlu1 %989  ;;  %2111 = vmatmul.mubr.msk.f32.vlgmr.msra.gmra.mrb[10].mxu1 %vm199_vm8, %v3508_v28  ;;  %2328 = vmatprep.subr.bf16.mxu0 %v2327_v55  ;;  %v1008_v50 = vpop.permute.xlu0 %1007 }
 0x3c9   :  { %v991_v26 = vsel %vm168_vm5, %v2651_v58, %v990_v23  ;;  %v996_v19 = vsel %vm168_vm5, %v990_v23, %v3597_v18  ;;  %2330 = vmatpush1.bf16.msra.mxu0 %v2329_v40  ;;  %1125 = vmatprep.mubr.f32.mxu0 %v4022_v29  ;;  %v1014_v36 = vsel %vm187_vm7, %v1008_v50, %v3666_v5 }
 0x3ca   :  { %v2331_v54 = vpack.c.bf16 %v996_v19, %v978_v6  ;;  %v2333_v57 = vpack.c.bf16 %v991_v26, %v973_v17  ;;  %1202 = vmatprep.mubr.f32.mxu1 %v4022_v29  ;;  %v1009_v18 = vsel %vm187_vm7, %v1006_v42, %v1008_v50 }
 0x3cb   :  { %2110 = vmatmul.mubr.msk.f32.gmra.mrb[14].mxu0 %vm199_vm8, %v3525_v10 }
 0x3cc   :  { %2112 = vmatmul.mubr.msk.f32.gmra.mrb[12].mxu1 %vm199_vm8, %v3513_v25  ;;  %2332 = vmatprep.subr.bf16.mxu0 %v2331_v54 }
 0x3cd   :  { %2334 = vmatpush1.bf16.msra.mxu0 %v2333_v57  ;;  %1208 = vmatprep.mubr.f32.mxu1 %v4022_v29 }
 0x3ce   :  { %1237 = vmatprep.subr.mxu0 %v1014_v36  ;;  %1285 = vmatprep.mubr.f32.mxu0 %v4022_v29 }
 0x3d0   :  { %2113 = vmatmul.mubr.msk.f32.gmra.mrb[14].mxu1 %vm199_vm8, %v3520_v52 }
 0x3d1   :  { %1238 = vmatpush1.msra.mxu0 %v1009_v18  ;;  %1214 = vmatprep.mubr.f32.mxu1 %v4022_v29 }
 0x3d2   :  { %2115 = vmatmul.mubr.msk.f32.vlgmr.msra.gmra.mrb[16].mxu0 %vm199_vm8, %v3508_v28 }
 0x3d3   :  { %1291 = vmatprep.mubr.f32.mxu0 %v4022_v29 }
 0x3d4   :  { %2114 = vmatmul.mubr.msk.f32.gmra.mrb[16].mxu1 %vm199_vm8, %v3525_v10 }
 0x3d6   :  { %2116 = vmatmul.mubr.msk.f32.gmra.mrb[18].mxu0 %vm199_vm8, %v3513_v25 }
 0x3d7   :  { %1297 = vmatprep.mubr.f32.mxu0 %v4022_v29 }
 0x3d9   :  { %v3777_v16 = vpop.permute.xlu1 %1017 }
 0x3da   :  { %2117 = vmatmul.mubr.msk.f32.gmra.mrb[20].mxu0 %vm199_vm8, %v3520_v52 }
 0x3db   :  { %1303 = vmatprep.mubr.f32.mxu0 %v4022_v29 }
 0x3dd   :  { %v3782_v35 = vpop.permute.xlu1 %1027 }
 0x3de   :  { %2118 = vmatmul.mubr.msk.f32.gmra.mrb[22].mxu0 %vm199_vm8, %v3525_v10 }
 0x3e1   :  { %v3786_v28 = vpop.permute.xlu1 %609 }
 0x3e2   :  { %v689_v5 = vadd.f32 %v3431_v47, %v3786_v28  ;;  %v768_v25 = vadd.f32 %v3533_v27, %v3786_v28  ;;  %v691_v20 = vadd.f32 %v3433_v12, %v3786_v28  ;;  %v843_v52 = vadd.f32 %v3531_v21, %v3786_v28 }
 0x3e3   :  { %v766_v39 = vadd.f32 %v3529_v1, %v3786_v28 }
 0x3e4   :  { %v854_v2 = vmax.f32 %v691_v20, 0.0  ;;  %v857_v53 = vmax.f32 %v843_v52, 0.0  ;;  %v853_v10 = vmax.f32 %v689_v5, 0.0  ;;  %v856_v58 = vmax.f32 %v768_v25, 0.0 }
 0x3e5   :  { %v855_v41 = vmax.f32 %v766_v39, 0.0 }
 0x3e6   :  { %v866_v61 = vmul.f32 %v854_v2, %v3130_v63  ;;  %v869_v47 = vmul.f32 %v857_v53, %v3146_v7  ;;  %v865_v27 = vmul.f32 %v853_v10, %v3128_v60  ;;  %v868_v37 = vmul.f32 %v856_v58, %v3169_v44 }
 0x3e7   :  { %v867_v12 = vmul.f32 %v855_v41, %v3156_v31 }
 0x3e8   :  { %v2335_v21 = vpack.c.bf16 %v866_v61, %v3442_v4  ;;  %v2343_v11 = vpack.c.bf16 %v869_v47, %v3460_v45  ;;  %v2337_v1 = vpack.c.bf16 %v865_v27, %v3436_v22  ;;  %v2345_v33 = vpack.c.bf16 %v868_v37, %v3439_v51  ;;  %v3816_v51 = vpop.permute.xlu0 %1022 }
 0x3e9   :  { %v3808_v15 = vpack.c.bf16 %v867_v12, %v3453_v59 }
 0x3ea   :  { %2336 = vmatprep.subr.bf16.mxu1 %v2335_v21  ;;  %2344 = vmatprep.subr.bf16.mxu0 %v2343_v11 }
 0x3eb   :  { %2338 = vmatpush1.bf16.xpose.msra.mxu1 %v2337_v1  ;;  %2346 = vmatpush1.bf16.xpose.msra.mxu0 %v2345_v33 }
 0x3ec   :  { %2340 = vmatprep.subr.bf16.mxu1 %v3808_v15  ;;  %v3836_v26 = vpop.permute.xlu0 %1032 }
 0x492   :  { %v1109_v30 = vpop.f32.mrb[8].mxu0 }
 0x493   :  { %v1110_v43 = vadd.f32 %v1109_v30, %v3777_v16  ;;  %v1111_v9 = vpop.f32.mrb[9].mxu0 }
 0x494   :  { %v1112_v4 = vadd.f32 %v1111_v9, %v3777_v16 }
 0x495   :  { %1310 = vst [vmem:[%s4011_s3] sm:$0xff] %v1110_v43  ;;  %v1334_v22 = vsub.f32 0.0, %v1110_v43 }
 0x496   :  { %1311 = vst [vmem:[%s4011_s3 + $0x8] sm:$0xff] %v1112_v4  ;;  %v1335_v59 = vsub.f32 0.0, %v1112_v4  ;;  %v1115_v45 = vpop.f32.mrb[10].mxu0 }
 0x497   :  { %v1358_v48 = vmul.f32 1.442695, %v1334_v22  ;;  %v1116_v42 = vadd.f32 %v1115_v45, %v3816_v51  ;;  %v1117_v14 = vpop.f32.mrb[11].mxu0 }
 0x498   :  { %v1360_v29 = vmul.f32 1.442695, %v1335_v59  ;;  %v1118_v3 = vadd.f32 %v1117_v14, %v3816_v51 }
 0x499   :  { %2655 = vpow2.f32 %v1358_v48  ;;  %1316 = vst [vmem:[%s4011_s3 + $0x30] sm:$0xff] %v1116_v42  ;;  %v1340_v13 = vsub.f32 0.0, %v1116_v42 }
 0x49a   :  { %2657 = vpow2.f32 %v1360_v29  ;;  %1317 = vst [vmem:[%s4011_s3 + $0x38] sm:$0xff] %v1118_v3  ;;  %v1341_v32 = vsub.f32 0.0, %v1118_v3  ;;  %v1121_v62 = vpop.f32.mrb[12].mxu0 }
 0x49b   :  { %v1370_v0 = vmul.f32 1.442695, %v1340_v13  ;;  %v1122_v56 = vadd.f32 %v1121_v62, %v3782_v35  ;;  %v1123_v38 = vpop.f32.mrb[13].mxu0  ;;  %v1198_v8 = vpop.f32.mrb[10].mxu1 }
 0x49c   :  { %v1372_v49 = vmul.f32 1.442695, %v1341_v32  ;;  %v1124_v55 = vadd.f32 %v1123_v38, %v3782_v35  ;;  %v1199_v40 = vadd.f32 %v1198_v8, %v3777_v16  ;;  %v1200_v17 = vpop.f32.mrb[11].mxu1  ;;  %v845_v38 = vadd.f32 %v3535_v46, %v3786_v28 }
 0x49d   :  { %2659 = vpow2.f32 %v1370_v0  ;;  %1322 = vst [vmem:[%s4011_s3 + $0x60] sm:$0xff] %v1122_v56  ;;  %v1346_v23 = vsub.f32 0.0, %v1122_v56  ;;  %v1201_v6 = vadd.f32 %v1200_v17, %v3777_v16 }
 0x49e   :  { %2661 = vpow2.f32 %v1372_v49  ;;  %1323 = vst [vmem:[%s4011_s3 + $0x68] sm:$0xff] %v1124_v55  ;;  %v1347_v19 = vsub.f32 0.0, %v1124_v55  ;;  %1312 = vst [vmem:[%s4011_s3 + $0x10] sm:$0xff] %v1199_v40  ;;  %v1336_v54 = vsub.f32 0.0, %v1199_v40  ;;  %v1127_v57 = vpop.f32.mrb[14].mxu0 }
 0x49f   :  { %v1382_v50 = vmul.f32 1.442695, %v1346_v23  ;;  %1313 = vst [vmem:[%s4011_s3 + $0x18] sm:$0xff] %v1201_v6  ;;  %v1128_v36 = vadd.f32 %v1127_v57, %v3836_v26  ;;  %v1129_v18 = vpop.f32.mrb[15].mxu0  ;;  %v1204_v5 = vpop.f32.mrb[12].mxu1  ;;  %v1337_v21 = vsub.f32 0.0, %v1201_v6 }
 0x4a0   :  { %v1384_v25 = vmul.f32 1.442695, %v1347_v19  ;;  %v1362_v20 = vmul.f32 1.442695, %v1336_v54  ;;  %v1130_v52 = vadd.f32 %v1129_v18, %v3836_v26  ;;  %v1205_v39 = vadd.f32 %v1204_v5, %v3816_v51  ;;  %v1206_v2 = vpop.f32.mrb[13].mxu1 }
 0x4a1   :  { %2663 = vpow2.f32 %v1382_v50  ;;  %1328 = vst [vmem:[%s4011_s3 + $0x90] sm:$0xff] %v1128_v36  ;;  %v1352_v53 = vsub.f32 0.0, %v1128_v36  ;;  %v1207_v10 = vadd.f32 %v1206_v2, %v3816_v51  ;;  %v1364_v13 = vmul.f32 1.442695, %v1337_v21 }
 0x4a2   :  { %2665 = vpow2.f32 %v1384_v25  ;;  %1329 = vst [vmem:[%s4011_s3 + $0x98] sm:$0xff] %v1130_v52  ;;  %v1353_v58 = vsub.f32 0.0, %v1130_v52  ;;  %1318 = vst [vmem:[%s4011_s3 + $0x40] sm:$0xff] %v1205_v39  ;;  %v1342_v41 = vsub.f32 0.0, %v1205_v39  ;;  %v858_v18 = vmax.f32 %v845_v38, 0.0 }
 0x4a3   :  { %v2656_v61 = vpop.eup %2655  ;;  %2667 = vpow2.f32 %v1362_v20  ;;  %v1394_v47 = vmul.f32 1.442695, %v1352_v53  ;;  %1319 = vst [vmem:[%s4011_s3 + $0x48] sm:$0xff] %v1207_v10  ;;  %v1210_v27 = vpop.f32.mrb[14].mxu1  ;;  %v1343_v32 = vsub.f32 0.0, %v1207_v10 }
 0x4a4   :  { %v2658_v37 = vpop.eup %2657  ;;  %v1406_v12 = vadd.f32 1.0, %v2656_v61  ;;  %v1396_v11 = vmul.f32 1.442695, %v1353_v58  ;;  %v1212_v1 = vpop.f32.mrb[15].mxu1  ;;  %v1374_v30 = vmul.f32 1.442695, %v1342_v41  ;;  %v1211_v43 = vadd.f32 %v1210_v27, %v3782_v35 }
 0x4a5   :  { %v1407_v33 = vadd.f32 1.0, %v2658_v37  ;;  %2669 = vpow2.f32 %v1394_v47  ;;  %v1287_v9 = vpop.f32.mrb[16].mxu0  ;;  %v1213_v4 = vadd.f32 %v1212_v1, %v3782_v35  ;;  %v1376_v57 = vmul.f32 1.442695, %v1343_v32 }
 0x4a6   :  { %2671 = vrcp.f32 %v1406_v12  ;;  %v1288_v22 = vadd.f32 %v1287_v9, %v3777_v16  ;;  %v1289_v59 = vpop.f32.mrb[17].mxu0  ;;  %1324 = vst [vmem:[%s4011_s3 + $0x70] sm:$0xff] %v1211_v43  ;;  %v1348_v48 = vsub.f32 0.0, %v1211_v43  ;;  %v870_v37 = vmul.f32 %v858_v18, %v3148_v24 }
 0x4a7   :  { %v2660_v45 = vpop.eup %2659  ;;  %2673 = vrcp.f32 %v1407_v33  ;;  %v1290_v42 = vadd.f32 %v1289_v59, %v3777_v16  ;;  %v1216_v14 = vpop.f32.mrb[16].mxu1  ;;  %1325 = vst [vmem:[%s4011_s3 + $0x78] sm:$0xff] %v1213_v4  ;;  %v1349_v8 = vsub.f32 0.0, %v1213_v4 }
 0x4a8   :  { %v2662_v29 = vpop.eup %2661  ;;  %v1412_v3 = vadd.f32 1.0, %v2660_v45  ;;  %2675 = vpow2.f32 %v1396_v11  ;;  %1314 = vst [vmem:[%s4011_s3 + $0x20] sm:$0xff] %v1288_v22  ;;  %v1218_v62 = vpop.f32.mrb[17].mxu1  ;;  %v1386_v56 = vmul.f32 1.442695, %v1348_v48  ;;  %v1217_v49 = vadd.f32 %v1216_v14, %v3836_v26 }
 0x4a9   :  { %v1413_v0 = vadd.f32 1.0, %v2662_v29  ;;  %2677 = vpow2.f32 %v1374_v30  ;;  %1315 = vst [vmem:[%s4011_s3 + $0x28] sm:$0xff] %v1290_v42  ;;  %v1293_v16 = vpop.f32.mrb[18].mxu0  ;;  %v1338_v17 = vsub.f32 0.0, %v1288_v22  ;;  %v3883_v23 = vadd.f32 %v1218_v62, %v3836_v26 }
 0x4aa   :  { %2679 = vrcp.f32 %v1412_v3  ;;  %v1295_v55 = vpop.f32.mrb[19].mxu0  ;;  %v3886_v6 = vadd.f32 %v1293_v16, %v3816_v51  ;;  %1330 = vst [vmem:[%s4011_s3 + $0xa0] sm:$0xff] %v1217_v49  ;;  %v1339_v25 = vsub.f32 0.0, %v1290_v42  ;;  %v1388_v52 = vmul.f32 1.442695, %v1349_v8 }
 0x4ab   :  { %v2664_v40 = vpop.eup %2663  ;;  %2681 = vrcp.f32 %v1413_v0  ;;  %v3892_v46 = vadd.f32 %v1295_v55, %v3816_v51  ;;  %1331 = vst [vmem:[%s4011_s3 + $0xa8] sm:$0xff] %v3883_v23  ;;  %v1366_v39 = vmul.f32 1.442695, %v1338_v17  ;;  %v1354_v10 = vsub.f32 0.0, %v1217_v49 }
 0x4ac   :  { %v2666_v19 = vpop.eup %2665  ;;  %v1418_v54 = vadd.f32 1.0, %v2664_v40  ;;  %2683 = vpow2.f32 %v1364_v13  ;;  %1320 = vst [vmem:[%s4011_s3 + $0x50] sm:$0xff] %v3886_v6  ;;  %v1368_v21 = vmul.f32 1.442695, %v1339_v25  ;;  %v1344_v45 = vsub.f32 0.0, %v3886_v6 }
 0x4ad   :  { %v2668_v28 = vpop.eup %2667  ;;  %v1419_v50 = vadd.f32 1.0, %v2666_v19  ;;  %2685 = vpow2.f32 %v1386_v56  ;;  %v1299_v36 = vpop.f32.mrb[20].mxu0  ;;  %1321 = vst [vmem:[%s4011_s3 + $0x58] sm:$0xff] %v3892_v46  ;;  %v1398_v59 = vmul.f32 1.442695, %v1354_v10  ;;  %v1345_v42 = vsub.f32 0.0, %v3892_v46 }
 0x4ae   :  { %2687 = vrcp.f32 %v1418_v54  ;;  %v1408_v5 = vadd.f32 1.0, %v2668_v28  ;;  %v1301_v51 = vpop.f32.mrb[21].mxu0  ;;  %v1300_v58 = vadd.f32 %v1299_v36, %v3782_v35 }
 0x4af   :  { %v2670_v20 = vpop.eup %2669  ;;  %2689 = vrcp.f32 %v1419_v50  ;;  %v1302_v61 = vadd.f32 %v1301_v51, %v3782_v35  ;;  %v1355_v35 = vsub.f32 0.0, %v3883_v23  ;;  %v1380_v8 = vmul.f32 1.442695, %v1345_v42 }
 0x4b0   :  { %v2672_v2 = vpop.eup %2671  ;;  %v1424_v53 = vadd.f32 1.0, %v2670_v20  ;;  %2691 = vpow2.f32 %v1376_v57  ;;  %1326 = vst [vmem:[%s4011_s3 + $0x80] sm:$0xff] %v1300_v58  ;;  %v1350_v29 = vsub.f32 0.0, %v1300_v58 }
 0x4b1   :  { %v2674_v41 = vpop.eup %2673  ;;  %2693 = vrcp.f32 %v1408_v5  ;;  %v1305_v47 = vpop.f32.mrb[22].mxu0  ;;  %v1454_v27 = vmul.f32 %v2672_v2, %v3128_v60  ;;  %1327 = vst [vmem:[%s4011_s3 + $0x88] sm:$0xff] %v1302_v61  ;;  %v1400_v32 = vmul.f32 1.442695, %v1355_v35  ;;  %v1351_v62 = vsub.f32 0.0, %v1302_v61 }
 0x4b2   :  { %v2676_v12 = vpop.eup %2675  ;;  %2695 = vrcp.f32 %v1424_v53  ;;  %v1306_v11 = vadd.f32 %v1305_v47, %v3836_v26  ;;  %v1307_v1 = vpop.f32.mrb[23].mxu0  ;;  %v1455_v33 = vmul.f32 %v2674_v41, %v3130_v63 }
 0x4b3   :  { %v2678_v30 = vpop.eup %2677  ;;  %v1425_v43 = vadd.f32 1.0, %v2676_v12  ;;  %2697 = vpow2.f32 %v1388_v52  ;;  %v1308_v9 = vadd.f32 %v1307_v1, %v3836_v26  ;;  %v3929_v26 = vpack.c.bf16 %v870_v37, %v3467_v34 }
 0x4b4   :  { %v2680_v4 = vpop.eup %2679  ;;  %v1414_v22 = vadd.f32 1.0, %v2678_v30  ;;  %2699 = vpow2.f32 %v1366_v39  ;;  %1332 = vst [vmem:[%s4011_s3 + $0xb0] sm:$0xff] %v1306_v11  ;;  %1542 = vmatprep.mubr.f32.mxu1 %v1455_v33  ;;  %v1378_v34 = vmul.f32 1.442695, %v1344_v45  ;;  %v1356_v55 = vsub.f32 0.0, %v1306_v11 }
 0x4b5   :  { %v2682_v48 = vpop.eup %2681  ;;  %2701 = vrcp.f32 %v1425_v43  ;;  %1333 = vst [vmem:[%s4011_s3 + $0xb8] sm:$0xff] %v1308_v9  ;;  %1543 = vmatmul.mubr.f32.vlgmr.msra.gmra.mrb[18].mxu1 %v1454_v27  ;;  %v1460_v0 = vmul.f32 %v2680_v4, %v3128_v60  ;;  %v1392_v23 = vmul.f32 1.442695, %v1351_v62  ;;  %v1357_v6 = vsub.f32 0.0, %v1308_v9  ;;  %s2778_s3 = smov 8  }
 0x4b6   :  { %v2684_v14 = vpop.eup %2683  ;;  %2703 = vrcp.f32 %v1414_v22  ;;  %2342 = vmatpush3.bf16.xpose.msra.mxu1 %v3808_v15  ;;  %v1461_v3 = vmul.f32 %v2682_v48, %v3130_v63  ;;  %v1390_v15 = vmul.f32 1.442695, %v1350_v29  ;;  %v1402_v50 = vmul.f32 1.442695, %v1356_v55 }
 0x4b7   :  { %v2686_v13 = vpop.eup %2685  ;;  %2705 = vpow2.f32 %v1368_v21  ;;  %2348 = vmatprep.subr.bf16.mxu1 %v3929_v26  ;;  %v1409_v57 = vadd.f32 1.0, %v2684_v14  ;;  %v1404_v5 = vmul.f32 1.442695, %v1357_v6 }
 0x4b8   :  { %v2688_v56 = vpop.eup %2687  ;;  %v1420_v16 = vadd.f32 1.0, %v2686_v13  ;;  %2707 = vpow2.f32 %v1398_v59  ;;  %1547 = vmatprep.mubr.f32.mxu1 %v1461_v3 }
 0x4b9   :  { %v2690_v38 = vpop.eup %2689  ;;  %1548 = vmatmul.mubr.f32.gmra.mrb[20].mxu1 %v1460_v0  ;;  %v1466_v19 = vmul.f32 %v2688_v56, %v3128_v60 }
 0x4ba   :  { %v2692_v49 = vpop.eup %2691  ;;  %2709 = vrcp.f32 %v1420_v16  ;;  %v1467_v40 = vmul.f32 %v2690_v38, %v3130_v63 }
 0x4bb   :  { %v2694_v17 = vpop.eup %2693  ;;  %2711 = vpow2.f32 %v1400_v32  ;;  %v1415_v10 = vadd.f32 1.0, %v2692_v49 }
 0x4bc   :  { %v2696_v54 = vpop.eup %2695  ;;  %2713 = vpow2.f32 %v1378_v34  ;;  %1552 = vmatprep.mubr.f32.mxu1 %v1467_v40  ;;  %v1456_v53 = vmul.f32 %v2694_v17, %v3156_v31 }
 0x4bd   :  { %v2698_v46 = vpop.eup %2697  ;;  %2715 = vpow2.f32 %v1380_v8  ;;  %1553 = vmatmul.mubr.f32.gmra.mrb[22].mxu1 %v1466_v19  ;;  %v1472_v52 = vmul.f32 %v2696_v54, %v3128_v60  ;;  %v2777_v54 = vmov 8  }
 0x4be   :  { %v2700_v28 = vpop.eup %2699  ;;  %2717 = vpow2.f32 %v1390_v15  ;;  %v1421_v61 = vadd.f32 1.0, %v2698_v46  ;;  %2653 = vset.pattern.permute.xlu0 %v2777_v54  ;;  %2654 = vset.pattern.permute.xlu1 %v2777_v54 }
 0x4bf   :  { %v2702_v36 = vpop.eup %2701  ;;  %v1410_v18 = vadd.f32 1.0, %v2700_v28  ;;  %2719 = vpow2.f32 %v1392_v23 }
 0x4c0   :  { %v2704_v25 = vpop.eup %2703  ;;  %2721 = vrcp.f32 %v1409_v57  ;;  %v1473_v51 = vmul.f32 %v2702_v36, %v3130_v63 }
 0x4c1   :  { %v2706_v20 = vpop.eup %2705  ;;  %2723 = vrcp.f32 %v1410_v18  ;;  %v1462_v63 = vmul.f32 %v2704_v25, %v3156_v31 }
 0x4c2   :  { %v2708_v39 = vpop.eup %2707  ;;  %v1411_v2 = vadd.f32 1.0, %v2706_v20  ;;  %2725 = vpow2.f32 %v1402_v50  ;;  %1557 = vmatprep.mubr.f32.mxu1 %v1473_v51 }
 0x4c3   :  { %v1426_v58 = vadd.f32 1.0, %v2708_v39  ;;  %2727 = vpow2.f32 %v1404_v5  ;;  %1558 = vmatmul.mubr.f32.gmra.mrb[24].mxu1 %v1472_v52 }
 0x4c4   :  { %v2710_v41 = vpop.eup %2709  ;;  %2729 = vrcp.f32 %v1411_v2  ;;  %2153 = vmatprep.mubr.f32.mxu1 %v1456_v53 }
 0x4c5   :  { %v2712_v47 = vpop.eup %2711  ;;  %2731 = vrcp.f32 %v1426_v58  ;;  %v1468_v60 = vmul.f32 %v2710_v41, %v3156_v31 }
 0x4c6   :  { %v2714_v27 = vpop.eup %2713  ;;  %2733 = vrcp.f32 %v1415_v10  ;;  %v1427_v43 = vadd.f32 1.0, %v2712_v47 }
 0x4c7   :  { %v2716_v37 = vpop.eup %2715  ;;  %v1416_v12 = vadd.f32 1.0, %v2714_v27  ;;  %2154 = vmatmul.mubr.f32.vlgmr.msra.gmra.mrb[26].mxu1 %v1462_v63  ;;  %2735 = vrcp.f32 %v1421_v61 }
 0x4c8   :  { %v2718_v21 = vpop.eup %2717  ;;  %v1417_v11 = vadd.f32 1.0, %v2716_v37  ;;  %2350 = vmatpush3.bf16.xpose.msra.mxu1 %v3929_v26  ;;  %2156 = vmatprep.mubr.f32.mxu1 %v1468_v60 }
 0x4c9   :  { %v2720_v1 = vpop.eup %2719  ;;  %2737 = vrcp.f32 %v1416_v12  ;;  %v1422_v33 = vadd.f32 1.0, %v2718_v21 }
 0x4ca   :  { %v2722_v30 = vpop.eup %2721  ;;  %2739 = vrcp.f32 %v1417_v11  ;;  %v1423_v35 = vadd.f32 1.0, %v2720_v1 }
 0x4cb   :  { %v2724_v9 = vpop.eup %2723  ;;  %2741 = vrcp.f32 %v1422_v33  ;;  %v1457_v48 = vmul.f32 %v2722_v30, %v3169_v44 }
 0x4cc   :  { %v2726_v4 = vpop.eup %2725  ;;  %2743 = vrcp.f32 %v1423_v35  ;;  %v1458_v22 = vmul.f32 %v2724_v9, %v3146_v7 }
 0x4cd   :  { %v2728_v59 = vpop.eup %2727  ;;  %v1428_v45 = vadd.f32 1.0, %v2726_v4  ;;  %2745 = vrcp.f32 %v1427_v43 }
 0x4ce   :  { %v2730_v42 = vpop.eup %2729  ;;  %v1429_v26 = vadd.f32 1.0, %v2728_v59  ;;  %1762 = vmatprep.mubr.f32.mxu0 %v1458_v22 }
 0x4cf   :  { %v2732_v14 = vpop.eup %2731  ;;  %2747 = vrcp.f32 %v1428_v45  ;;  %1763 = vmatmul.mubr.f32.vlgmr.msra.gmra.mrb[24].mxu0 %v1457_v48  ;;  %v1459_v13 = vmul.f32 %v2730_v42, %v3148_v24 }
 0x4d0   :  { %2749 = vrcp.f32 %v1429_v26  ;;  %v1474_v29 = vmul.f32 %v2732_v14, %v3156_v31  ;;  %v2734_v3 = vpop.eup %2733 }
 0x4d1   :  { %v2736_v32 = vpop.eup %2735  ;;  %v1463_v34 = vmul.f32 %v2734_v3, %v3169_v44 }
 0x4d2   :  { %2157 = vmatmul.mubr.f32.gmra.mrb[28].mxu1 %v1474_v29  ;;  %v1469_v40 = vmul.f32 %v2736_v32, %v3169_v44 }
 0x4d3   :  { %v2738_v62 = vpop.eup %2737  ;;  %2163 = vmatprep.mubr.f32.mxu1 %v1459_v13 }
 0x4d4   :  { %v2740_v0 = vpop.eup %2739  ;;  %v1464_v56 = vmul.f32 %v2738_v62, %v3146_v7 }
 0x4d5   :  { %v2742_v16 = vpop.eup %2741  ;;  %v1465_v38 = vmul.f32 %v2740_v0, %v3148_v24 }
 0x4d6   :  { %v2744_v8 = vpop.eup %2743  ;;  %1767 = vmatprep.mubr.f32.mxu0 %v1464_v56  ;;  %v1470_v49 = vmul.f32 %v2742_v16, %v3146_v7  ;;  %v24_v16 = vld [vmem:[%s4009_s2 + $0x38] sm:$0xff] }
 0x4d7   :  { %1768 = vmatmul.mubr.f32.gmra.mrb[26].mxu0 %v1463_v34  ;;  %2164 = vmatmul.mubr.f32.vlgmr.msra.gmra.mrb[30].mxu1 %v1465_v38  ;;  %v1471_v31 = vmul.f32 %v2744_v8, %v3148_v24  ;;  %v2746_v15 = vpop.eup %2745  ;;  %v25_v34 = vld [vmem:[%s4009_s2 + $0x40] sm:$0xff]  ;;  %v26_v8 = vld [vmem:[%s4009_s2 + $0x48] sm:$0xff] }
 0x4d8   :  { %1772 = vmatprep.mubr.f32.mxu0 %v1470_v49  ;;  %v1475_v19 = vmul.f32 %v2746_v15, %v3169_v44  ;;  %v2351_v38 = vpack.c.bf16 %v25_v34, %v24_v16  ;;  %v27_v49 = vld [vmem:[%s4009_s2 + $0x50] sm:$0xff] }
 0x4d9   :  { %v2748_v55 = vpop.eup %2747  ;;  %2166 = vmatprep.mubr.f32.mxu1 %v1471_v31  ;;  %v2355_v31 = vpack.c.bf16 %v27_v49, %v26_v8 }
 0x4da   :  { %v2750_v17 = vpop.eup %2749  ;;  %v1476_v23 = vmul.f32 %v2748_v55, %v3146_v7  ;;  %2352 = vmatprep.subr.bf16.mxu1 %v2351_v38 }
 0x4db   :  { %1773 = vmatmul.mubr.f32.gmra.mrb[28].mxu0 %v1469_v40  ;;  %v1477_v6 = vmul.f32 %v2750_v17, %v3148_v24  ;;  %2354 = vmatpush3.bf16.msra.mxu1 %v2351_v38  ;;  %v28_v17 = vld [vmem:[%s4009_s2 + $0x58] sm:$0xff] }
 0x4dc   :  { %1777 = vmatprep.mubr.f32.mxu0 %v1476_v23  ;;  %2356 = vmatprep.subr.bf16.mxu1 %v2355_v31  ;;  %v29_v23 = vld [vmem:[%s4009_s2 + $0x60] sm:$0xff] }
 0x4dd   :  { %2167 = vmatmul.mubr.f32.gmra.mrb[32].mxu1 %v1477_v6  ;;  %v2359_v54 = vpack.c.bf16 %v29_v23, %v28_v17 }
 0x4df   :  { %1778 = vmatmul.mubr.f32.gmra.mrb[30].mxu0 %v1475_v19  ;;  %2358 = vmatpush3.bf16.msra.mxu1 %v2355_v31 }
 0x4e0   :  { %2360 = vmatprep.subr.bf16.mxu0 %v2359_v54 }
 0x4e1   :  { %2362 = vmatpush3.bf16.msra.mxu0 %v2359_v54 }
 0x588   :  { %v1544_v57 = vpop.f32.mrb[18].mxu1 }
 0x589   :  { %v1546_v46 = vpop.f32.mrb[19].mxu1 }
 0x58c   :  { %v1549_v28 = vpop.f32.mrb[20].mxu1 }
 0x58d   :  { %v1551_v50 = vpop.f32.mrb[21].mxu1 }
 0x590   :  { %v1554_v36 = vpop.f32.mrb[22].mxu1 }
 0x591   :  { %v1556_v18 = vpop.f32.mrb[23].mxu1 }
 0x596   :  { %v1559_v5 = vpop.f32.mrb[24].mxu1 }
 0x597   :  { %v1561_v25 = vpop.f32.mrb[25].mxu1 }
 0x59a   :  { %v2155_v7 = vpop.f32.mrb[26].mxu1 }
 0x59b   :  { %v1635_v51 = vadd.f32 %v2155_v7, %v1549_v28  ;;  %v1629_v20 = vpop.f32.mrb[27].mxu1 }
 0x59c   :  { %v3956_v24 = vadd.f32 %v1629_v20, %v1544_v57 }
 0x59d   :  { %v1649_v52 = vmax.f32 %v1635_v51, 1e-06 }
 0x59e   :  { %v1648_v26 = vmax.f32 %v3956_v24, 1e-06 }
 0x59f   :  { %2751 = vrcp.f32 %v1649_v52 }
 0x5a2   :  { %v1764_v44 = vpop.f32.mrb[24].mxu0 }
 0x5a3   :  { %v1766_v39 = vpop.f32.mrb[25].mxu0 }
 0x5a5   :  { %v2158_v2 = vpop.f32.mrb[28].mxu1 }
 0x5a6   :  { %v1645_v53 = vadd.f32 %v2158_v2, %v1559_v5  ;;  %v1639_v10 = vpop.f32.mrb[29].mxu1 }
 0x5a7   :  { %v3958_v58 = vadd.f32 %v1639_v10, %v1554_v36 }
 0x5a8   :  { %v1651_v41 = vmax.f32 %v1645_v53, 1e-06 }
 0x5a9   :  { %v2752_v61 = vpop.eup %2751  ;;  %v1650_v47 = vmax.f32 %v3958_v58, 1e-06 }
 0x5aa   :  { %2753 = vrcp.f32 %v1651_v41  ;;  %v1769_v63 = vpop.f32.mrb[26].mxu0  ;;  %v2165_v27 = vpop.f32.mrb[30].mxu1  ;;  %1663 = vperm.xlu0 %2653, %v2752_v61  }
 0x5ab   :  { %2755 = vrcp.f32 %v1650_v47  ;;  %v1771_v60 = vpop.f32.mrb[27].mxu0  ;;  %v1855_v37 = vadd.f32 %v2165_v27, %v1769_v63  ;;  %v1849_v12 = vpop.f32.mrb[31].mxu1  ;;  %v31_v63 = vld [vmem:[%s4009_s2 + $0x70] sm:$0xff] }
 0x5ac   :  { %v3961_v21 = vadd.f32 %v1849_v12, %v1764_v44  ;;  %v2119_v60 = vld [vmem:[%s4009_s2 + $0x78] ss:$0 sm:$0xff] }
 0x5ad   :  { %v1869_v11 = vmax.f32 %v1855_v37, 1e-06 }
 0x5ae   :  { %v1774_v1 = vpop.f32.mrb[28].mxu0  ;;  %v1868_v14 = vmax.f32 %v3961_v21, 1e-06 }
 0x5af   :  { %2757 = vrcp.f32 %v1869_v11  ;;  %v1776_v33 = vpop.f32.mrb[29].mxu0 }
 0x5b0   :  { %v2168_v30 = vpop.f32.mrb[32].mxu1 }
 0x5b1   :  { %v1859_v43 = vpop.f32.mrb[33].mxu1 }
 0x5b2   :  { %v1779_v35 = vpop.f32.mrb[30].mxu0  ;;  %v1860_v9 = vadd.f32 %v1859_v43, %v1774_v1 }
 0x5b3   :  { %v1865_v4 = vadd.f32 %v2168_v30, %v1779_v35  ;;  %v1781_v22 = vpop.f32.mrb[31].mxu0  ;;  %v2122_v30 = vld [vmem:[%s4009_s2 + $0x79] ss:$0 sm:$0xff] }
 0x5b4   :  { %v2754_v59 = vpop.eup %2753  ;;  %v1870_v45 = vmax.f32 %v1860_v9, 1e-06 }
 0x5b5   :  { %v2756_v48 = vpop.eup %2755  ;;  %v1871_v42 = vmax.f32 %v1865_v4, 1e-06  ;;  %1673 = vperm.xlu0 %2653, %v2754_v59  }
 0x5b6   :  { %2759 = vrcp.f32 %v1870_v45  ;;  %1668 = vperm.xlu1 %2654, %v2756_v48  }
 0x5b7   :  { %2761 = vrcp.f32 %v1871_v42 }
 0x5b8   :  { %2763 = vrcp.f32 %v1648_v26 }
 0x5b9   :  { %v2758_v29 = vpop.eup %2757  ;;  %2765 = vrcp.f32 %v1868_v14 }
 0x5ba   :  { %1883 = vperm.xlu1 %2654, %v2758_v29  }
 0x5c0   :  { %v2760_v3 = vpop.eup %2759 }
 0x5c1   :  { %v2762_v13 = vpop.eup %2761  ;;  %1888 = vperm.xlu1 %2654, %v2760_v3  }
 0x5c2   :  { %1893 = vperm.xlu0 %2653, %v2762_v13   ;;  %v2764_v32 = vpop.eup %2763 }
 0x5c3   :  { %v2766_v62 = vpop.eup %2765 }
 0x5c5   :  { %1658 = vperm.xlu1 %2654, %v2764_v32  }
 0x5c6   :  { %1878 = vperm.xlu0 %2653, %v2766_v62  }
 0x629   :  { %v1664_v0 = vpop.permute.xlu0 %1663 }
 0x62a   :  { %v1677_v56 = vmul.f32 %v1664_v0, %v1635_v51 }
 0x62c   :  { %1681 = vrot.lane.b32.xlu1 %v1677_v56, %s2778_s3 }
 0x634   :  { %v1674_v15 = vpop.permute.xlu0 %1673 }
 0x635   :  { %v1679_v55 = vmul.f32 %v1674_v15, %v1645_v53  ;;  %v1669_v40 = vpop.permute.xlu1 %1668 }
 0x636   :  { %v1678_v6 = vmul.f32 %v1669_v40, %v3958_v58 }
 0x637   :  { %1689 = vrot.lane.b32.xlu0 %v1679_v55, %s2779_s23 }
 0x639   :  { %v1884_v19 = vpop.permute.xlu1 %1883 }
 0x63a   :  { %v1897_v57 = vmul.f32 %v1884_v19, %v1855_v37 }
 0x63b   :  { %1685 = vrot.lane.b32.xlu0 %v1678_v6, %s2780_s28 }
 0x63c   :  { %1901 = vrot.lane.b32.xlu1 %v1897_v57, %s2778_s3 }
 0x640   :  { %v1889_v46 = vpop.permute.xlu1 %1888 }
 0x641   :  { %v1894_v28 = vpop.permute.xlu0 %1893  ;;  %v1898_v50 = vmul.f32 %v1889_v46, %v1860_v9 }
 0x642   :  { %v1899_v36 = vmul.f32 %v1894_v28, %v1865_v4 }
 0x643   :  { %1905 = vrot.lane.b32.xlu1 %v1898_v50, %s2780_s28 }
 0x644   :  { %1909 = vrot.lane.b32.xlu0 %v1899_v36, %s2779_s23  ;;  %v1659_v5 = vpop.permute.xlu1 %1658 }
 0x645   :  { %v1879_v18 = vpop.permute.xlu0 %1878  ;;  %v1676_v51 = vmul.f32 %v1659_v5, %v3956_v24  ;;  %v30_v24 = vld [vmem:[%s4009_s2 + $0x68] sm:$0xff] }
 0x646   :  { %v1896_v53 = vmul.f32 %v1879_v18, %v3961_v21  ;;  %v2363_v27 = vpack.c.bf16 %v31_v63, %v30_v24 }
 0x648   :  { %2364 = vmatprep.subr.bf16.mxu0 %v2363_v27 }
 0x649   :  { %2366 = vmatpush3.bf16.msra.mxu0 %v2363_v27 }
 0x69e   :  { %v1682_v7 = vpop.permute.xlu1 %1681 }
 0x69f   :  { %v1693_v20 = vsel %vm1692_vm9, %v1676_v51, %v1682_v7 }
 0x6a9   :  { %v1690_v25 = vpop.permute.xlu0 %1689 }
 0x6ad   :  { %v1686_v52 = vpop.permute.xlu0 %1685 }
 0x6ae   :  { %v1695_v44 = vsel %vm1694_vm10, %v1693_v20, %v1686_v52  ;;  %v1902_v2 = vpop.permute.xlu1 %1901 }
 0x6af   :  { %v1697_v39 = vsel %vm1696_vm11, %v1695_v44, %v1690_v25  ;;  %v1912_v10 = vsel %vm1692_vm9, %v1896_v53, %v1902_v2 }
 0x6b0   :  { %2177 = vmatprep.mubr.msk.f32.mxu1 %vm1919_vm12, %v1697_v39 }
 0x6b5   :  { %v1906_v58 = vpop.permute.xlu1 %1905 }
 0x6b6   :  { %v1910_v41 = vpop.permute.xlu0 %1909  ;;  %v1913_v61 = vsel %vm1694_vm10, %v1912_v10, %v1906_v58 }
 0x6b7   :  { %v1914_v47 = vsel %vm1696_vm11, %v1913_v61, %v1910_v41 }
 0x6b8   :  { %2178 = vmatmul.mubr.msk.f32.vlgmr.msra.gmra.mrb[34].mxu1 %vm1919_vm12, %v1914_v47 }
 0x78b   :  { %v2179_v37 = vpop.f32.mrb[34].mxu1 }
 0x78c   :  { %v1998_v12 = vadd.f32 %v2179_v37, %v2119_v60  ;;  %v1992_v21 = vpop.f32.mrb[35].mxu1 }
 0x78d   :  { %v1993_v11 = vadd.f32 %v2119_v60, %v1992_v21 }
 0x78e   :  { %v2002_v33 = vmax.f32 %v1998_v12, 0.0 }
 0x78f   :  { %v2001_v1 = vmax.f32 %v1993_v11, 0.0 }
 0x791   :  { %2188 = vmatprep.mubr.msk.f32.mxu0 %vm1919_vm12, %v2001_v1 }
 0x792   :  { %2189 = vmatmul.mubr.msk.f32.vlgmr.msra.gmra.mrb[32].mxu0 %vm1919_vm12, %v2002_v33 }
 0x865   :  { %v2190_v43 = vpop.f32.mrb[32].mxu0 }
 0x866   :  { %v2085_v35 = vadd.f32 %v2190_v43, %v2122_v30  ;;  %v2079_v9 = vpop.f32.mrb[33].mxu0 }
 0x867   :  { %v2080_v4 = vadd.f32 %v2122_v30, %v2079_v9 }
 0x868   :  { %2089 = vst [vmem:[%s4012_s4 + $0x8] sm:$0xff] %v2085_v35 }
 0x869   :  { %2088 = vst [vmem:[%s4012_s4] sm:$0xff] %v2080_v4 }

</bundles_post_ra>
